<compile_context>
chip_gen: v7x
topology: tpu7x:2x2x1
jax: 0.10.0
libtpu: 0.0.40
codegen_flags: <defaults>
</compile_context>

<pallas_src>
import jax
import jax.numpy as jnp
from jax.experimental import pallas as pl
from jax.experimental.pallas import tpu as pltpu

KROWS = 72          # 9 shift blocks x 8 stack rows (3 channels + ones + 4 zero rows)
BIAS_COL = 4 * 8 + 3  # (dy=0,dx=0) block, "ones" row -> conv1 bias column


def _pick_chunk(hw):
    if hw <= 4096:
        return hw
    for c in (4096, 2048, 1024, 512, 256, 128):
        if hw % c == 0:
            return c
    # TODO(synk): pad the pixel axis when HW is not divisible by 128 so very large
    # non-power-of-two images can still be chunked for v7x VMEM.
    return hw


def make_kernel(H, W, C1, num_iter):
    HW = H * W
    assert (W & (W - 1)) == 0, "W must be a power of two (cheap col-index bit math)"
    OFF = ((W + 1 + 127) // 128) * 128      # covers every needed shift |s| <= W+1
    PADW = HW + 2 * OFF
    CH = _pick_chunk(HW)
    n_chunks = HW // CH
    assert n_chunks * CH == HW

    def kernel(img_ref, w1_ref, w2_ref, b2_ref, out_ref,
               center_ref, epad_ref, stack_ref):
        inf = jnp.float32(jnp.inf)

        # ---- hoisted index math / masks (computed once per image) ----
        lane = jax.lax.broadcasted_iota(jnp.int32, (1, HW), 1)
        col = lane & (W - 1)
        ok_l = col >= 1            # reading pixel (r, c-1) is in-bounds
        ok_r = col <= (W - 2)      # reading pixel (r, c+1) is in-bounds

        img = img_ref[...]                       # (1, HW)
        out_ref[...] = img                       # out = img.clone()
        center_ref[...] = img                    # center = img

        # ---- minimal scratch init (only parts read before being written) ----
        epad_ref[:, 0:OFF] = jnp.full((1, OFF), inf, jnp.float32)
        epad_ref[:, OFF + HW:PADW] = jnp.full((1, OFF), inf, jnp.float32)
        stack_ref[:, 0:OFF] = jnp.zeros((8, OFF), jnp.float32)
        stack_ref[:, OFF + HW:PADW] = jnp.zeros((8, OFF), jnp.float32)
        stack_ref[3:4, OFF:OFF + HW] = jnp.ones((1, HW), jnp.float32)   # bias row
        stack_ref[4:8, OFF:OFF + HW] = jnp.zeros((4, HW), jnp.float32)  # padding rows

        def soft_erode(x):
            # min over plus-neighborhood; pad region of epad is +inf so row-OOB
            # needs no mask, only the two hoisted column masks are used.
            epad_ref[:, OFF:OFF + HW] = x
            up = epad_ref[:, OFF - W:OFF - W + HW]
            down = epad_ref[:, OFF + W:OFF + W + HW]
            left = jnp.where(ok_l, epad_ref[:, OFF - 1:OFF - 1 + HW], inf)
            right = jnp.where(ok_r, epad_ref[:, OFF + 1:OFF + 1 + HW], inf)
            m = jnp.minimum(jnp.minimum(up, down), jnp.minimum(left, right))
            return jnp.minimum(m, x)

        for _ in range(num_iter):
            center = center_ref[...]
            inner = soft_erode(soft_erode(center))     # iter_erode(num_iter=2)
            bound = center - inner
            cur = out_ref[...]

            # channel stack: rows 0..2 = (bound, center, out); row 3 = ones (bias);
            # rows 4..7 stay zero. Pad columns stay zero -> conv zero-padding for free.
            stack_ref[0:1, OFF:OFF + HW] = bound
            stack_ref[1:2, OFF:OFF + HW] = center
            stack_ref[2:3, OFF:OFF + HW] = cur
            center_ref[...] = inner

            # conv 3x3 (+bias) -> ReLU -> conv 1x1 -> sigmoid -> masked update,
            # chunked along the pixel axis to bound VMEM intermediates.
            for c in range(n_chunks):
                cs, ce = c * CH, (c + 1) * CH
                b0 = OFF + cs
                pieces = []
                for dy in (-1, 0, 1):
                    for dx in (-1, 0, 1):
                        s = dy * W + dx
                        sl = stack_ref[:, b0 + s:b0 + s + CH]     # (8, CH) full-width
                        if dx == 1:
                            sl = jnp.where(ok_r[:, cs:ce], sl, 0.0)
                        elif dx == -1:
                            sl = jnp.where(ok_l[:, cs:ce], sl, 0.0)
                        pieces.append(sl)
                xcol = jnp.concatenate(pieces, axis=0)            # (72, CH)

                hidden = jnp.dot(w1_ref[...], xcol,
                                 preferred_element_type=jnp.float32)   # bias folded in
                hidden = jnp.maximum(hidden, 0.0)                 # ReLU
                logits = jnp.dot(w2_ref[...], hidden,
                                 preferred_element_type=jnp.float32) + b2_ref[...]

                bnd = stack_ref[0:1, b0:b0 + CH]
                delta = jnp.where(bnd == 1.0, jax.nn.sigmoid(logits), 0.0)
                out_ref[:, cs:ce] = out_ref[:, cs:ce] - delta
        # TODO(synk): binarize_out straight-through estimator (val_mode=True) is a
        # training-time trick; the val_mode=False path implemented here is identity.

    return kernel, OFF, PADW


def erosion_skeleton_forward(img, w1, b1, w2, b2, num_iter=3):
    """img: (N, 1, H, W) float32, binary mask. Weights follow PyTorch Conv2d layouts."""
    N, C, H, W = img.shape
    assert C == 1, "ErosionSkeletonNet2D concatenation pattern implies a 1-channel image"
    HW = H * W
    C1 = w1.shape[0]
    assert w1.shape == (C1, 3, 3, 3) and w2.shape == (1, C1, 1, 1)

    img_flat = img.reshape(N, 1, HW).astype(jnp.float32)

    # Conv1 weights rearranged to match the xcol row ordering
    # (row = shift_index*8 + stack_row, stack rows = [bound, center, out, ones, 0,0,0,0])
    w1_r = jnp.transpose(w1.astype(jnp.float32), (0, 2, 3, 1)).reshape(C1, 9, 3)
    w1_mat = jnp.concatenate(
        [w1_r, jnp.zeros((C1, 9, 5), jnp.float32)], axis=2).reshape(C1, KROWS)
    w1_mat = w1_mat.at[:, BIAS_COL].set(b1.astype(jnp.float32))   # fold conv1 bias
    w2_row = w2.reshape(1, C1).astype(jnp.float32)
    b2_mat = b2.reshape(1, 1).astype(jnp.float32)

    kernel, OFF, PADW = make_kernel(H, W, C1, num_iter)

    out_flat = pl.pallas_call(
        kernel,
        out_shape=jax.ShapeDtypeStruct((N, 1, HW), jnp.float32),
        grid_spec=pltpu.PrefetchScalarGridSpec(
            num_scalar_prefetch=0,
            grid=(N,),
            in_specs=[
                pl.BlockSpec((None, 1, HW), lambda b: (b, 0, 0)),   # image (per batch)
                pl.BlockSpec((C1, KROWS), lambda b: (0, 0)),        # conv1 weights (+bias)
                pl.BlockSpec((1, C1), lambda b: (0, 0)),            # conv2 (1x1) weights
                pl.BlockSpec((1, 1), lambda b: (0, 0)),             # conv2 bias
            ],
            out_specs=pl.BlockSpec((None, 1, HW), lambda b: (b, 0, 0)),
            scratch_shapes=[
                pltpu.VMEM((1, HW), jnp.float32),     # center carry
                pltpu.VMEM((1, PADW), jnp.float32),   # +inf-padded buffer for erosion shifts
                pltpu.VMEM((8, PADW), jnp.float32),   # zero-padded channel stack for the conv
            ],
        ),
        compiler_params=pltpu.CompilerParams(dimension_semantics=("parallel",)),
    )(img_flat, w1_mat, w2_row, b2_mat)

    return out_flat.reshape(N, 1, H, W), None


def forward_reference(img, w1, b1, w2, b2, num_iter):
    """Pure-JAX (XLA) reference of the same forward pass, for verification."""
    def soft_erode(x):
        p1 = -jax.lax.reduce_window(-x, -jnp.inf, jax.lax.max,
                                    (1, 1, 3, 1), (1, 1, 1, 1),
                                    ((0, 0), (0, 0), (1, 1), (0, 0)))
        p2 = -jax.lax.reduce_window(-x, -jnp.inf, jax.lax.max,
                                    (1, 1, 1, 3), (1, 1, 1, 1),
                                    ((0, 0), (0, 0), (0, 0), (1, 1)))
        return jnp.minimum(p1, p2)

    dn = ("NCHW", "OIHW", "NCHW")
    center = img
    out = img
    for _ in range(num_iter):
        inner = soft_erode(soft_erode(center))
        bound = center - inner
        mask = (bound == 1.0).astype(img.dtype)
        x = jnp.concatenate([bound, center, out], axis=1)
        h = jax.lax.conv_general_dilated(x, w1, (1, 1), ((1, 1), (1, 1)),
                                         dimension_numbers=dn)
        h = jnp.maximum(h + b1[None, :, None, None], 0.0)
        logits = jax.lax.conv_general_dilated(h, w2, (1, 1), ((0, 0), (0, 0)),
                                              dimension_numbers=dn)
        logits = logits + b2[None, :, None, None]
        out = out - jax.nn.sigmoid(logits) * mask
        center = inner
    return out


if __name__ == "__main__":
    N, C, H, W = 2, 1, 16, 16
    C1 = 32          # skel_channels (reduced from default 128 for the small test)
    NUM_ITER = 3     # num_iter default

    key = jax.random.PRNGKey(0)
    k_img, k_w1, k_b1, k_w2, k_b2 = jax.random.split(key, 5)

    # Binary input mask image, as used for skeletonization.
    img = (jax.random.uniform(k_img, (N, C, H, W)) > 0.5).astype(jnp.float32)

    # skel_net parameters (depth=1, hypo_in_channels=3):
    #   Conv2d(3, C1, kernel=3, padding=1) -> ReLU -> Conv2d(C1, 1, kernel=1)
    w1 = 0.2 * jax.random.normal(k_w1, (C1, 3 * C, 3, 3), jnp.float32)
    b1 = 0.1 * jax.random.normal(k_b1, (C1,), jnp.float32)
    w2 = 0.2 * jax.random.normal(k_w2, (1, C1, 1, 1), jnp.float32)
    b2 = 0.1 * jax.random.normal(k_b2, (1,), jnp.float32)

    out, aux = erosion_skeleton_forward(img, w1, b1, w2, b2, num_iter=NUM_ITER)
    out = jax.block_until_ready(out)
    assert aux is None
    assert out.shape == img.shape and out.dtype == jnp.float32

    ref = forward_reference(img, w1, b1, w2, b2, NUM_ITER)
    max_err = float(jnp.max(jnp.abs(out - ref)))
    if not bool(jnp.allclose(out, ref, atol=5e-3, rtol=5e-3)):
        raise AssertionError(f"Pallas kernel mismatch vs reference (max abs err {max_err})")

    print("KERNEL_OK")
</pallas_src>

<mosaic_0001>
module attributes {stable_mosaic.version = 11 : i64} {
  func.func @kernel(%arg0: i32, %arg1: memref<1x1x256xf32, #tpu.memory_space<vmem>>, %arg2: memref<32x72xf32, #tpu.memory_space<vmem>>, %arg3: memref<1x32xf32, #tpu.memory_space<vmem>>, %arg4: memref<1x1xf32, #tpu.memory_space<vmem>>, %arg5: memref<1x1x256xf32, #tpu.memory_space<vmem>>, %arg6: memref<1x256xf32, #tpu.memory_space<vmem>>, %arg7: memref<1x512xf32, #tpu.memory_space<vmem>>, %arg8: memref<8x512xf32, #tpu.memory_space<vmem>>) attributes {dimension_semantics = [#tpu.dimension_semantics<parallel>], iteration_bounds = array<i64: 2>, scalar_prefetch = 0 : i64, scratch_operands = 3 : i64, tpu.core_type = #tpu.core_type<tc>, window_params = [{transform_indices = @transform_0, window_bounds = array<i64: 1, 1, 256>}, {pipeline_mode = #tpu.pipeline_mode<synchronous>, transform_indices = @transform_1, window_bounds = array<i64: 32, 72>}, {pipeline_mode = #tpu.pipeline_mode<synchronous>, transform_indices = @transform_2, window_bounds = array<i64: 1, 32>}, {pipeline_mode = #tpu.pipeline_mode<synchronous>, transform_indices = @transform_3, window_bounds = array<i64: 1, 1>}, {transform_indices = @transform_4, window_bounds = array<i64: 1, 1, 256>}]} {
    %0 = tpu.iota {dimensions = array<i32: 1>} : vector<1x256xi32>
    %c15_i32 = arith.constant 15 : i32
    %1 = vector.broadcast %c15_i32 : i32 to vector<1x256xi32>
    %2 = arith.andi %0, %1 : vector<1x256xi32>
    %c1_i32 = arith.constant 1 : i32
    %3 = vector.broadcast %c1_i32 : i32 to vector<1x256xi32>
    %4 = arith.cmpi sge, %2, %3 : vector<1x256xi32>
    %c14_i32 = arith.constant 14 : i32
    %5 = vector.broadcast %c14_i32 : i32 to vector<1x256xi32>
    %6 = arith.cmpi sle, %2, %5 : vector<1x256xi32>
    %c0 = arith.constant 0 : index
    %c0_0 = arith.constant 0 : index
    %c0_1 = arith.constant 0 : index
    %7 = vector.load %arg1[%c0, %c0_0, %c0_1] : memref<1x1x256xf32, #tpu.memory_space<vmem>>, vector<1x1x256xf32>
    %8 = vector.shape_cast %7 : vector<1x1x256xf32> to vector<1x256xf32>
    %c0_2 = arith.constant 0 : index
    %c0_3 = arith.constant 0 : index
    %c0_4 = arith.constant 0 : index
    %9 = vector.load %arg5[%c0_2, %c0_3, %c0_4] : memref<1x1x256xf32, #tpu.memory_space<vmem>>, vector<1x1x256xf32>
    %10 = vector.shape_cast %9 : vector<1x1x256xf32> to vector<1x256xf32>
    %11 = vector.shape_cast %8 : vector<1x256xf32> to vector<1x1x256xf32>
    tpu.vector_store %arg5[%c0_2, %c0_3, %c0_4], %11 {strides = array<i32>} : memref<1x1x256xf32, #tpu.memory_space<vmem>>, vector<1x1x256xf32>,
    %c0_5 = arith.constant 0 : index
    %c0_6 = arith.constant 0 : index
    %12 = vector.load %arg6[%c0_5, %c0_6] : memref<1x256xf32, #tpu.memory_space<vmem>>, vector<1x256xf32>
    tpu.vector_store %arg6[%c0_5, %c0_6], %8 {strides = array<i32>} : memref<1x256xf32, #tpu.memory_space<vmem>>, vector<1x256xf32>,
    %cst = arith.constant 0x7F800000 : f32
    %13 = vector.broadcast %cst : f32 to vector<1x128xf32>
    %c0_7 = arith.constant 0 : index
    %c0_8 = arith.constant 0 : index
    %14 = vector.load %arg7[%c0_7, %c0_8] : memref<1x512xf32, #tpu.memory_space<vmem>>, vector<1x128xf32>
    tpu.vector_store %arg7[%c0_7, %c0_8], %13 {strides = array<i32>} : memref<1x512xf32, #tpu.memory_space<vmem>>, vector<1x128xf32>,
    %cst_9 = arith.constant 0x7F800000 : f32
    %15 = vector.broadcast %cst_9 : f32 to vector<1x128xf32>
    %c0_10 = arith.constant 0 : index
    %c384 = arith.constant 384 : index
    %16 = vector.load %arg7[%c0_10, %c384] : memref<1x512xf32, #tpu.memory_space<vmem>>, vector<1x128xf32>
    tpu.vector_store %arg7[%c0_10, %c384], %15 {strides = array<i32>} : memref<1x512xf32, #tpu.memory_space<vmem>>, vector<1x128xf32>,
    %cst_11 = arith.constant 0.000000e+00 : f32
    %17 = vector.broadcast %cst_11 : f32 to vector<8x128xf32>
    %c0_12 = arith.constant 0 : index
    %c0_13 = arith.constant 0 : index
    %18 = vector.load %arg8[%c0_12, %c0_13] : memref<8x512xf32, #tpu.memory_space<vmem>>, vector<8x128xf32>
    tpu.vector_store %arg8[%c0_12, %c0_13], %17 {strides = array<i32>} : memref<8x512xf32, #tpu.memory_space<vmem>>, vector<8x128xf32>,
    %cst_14 = arith.constant 0.000000e+00 : f32
    %19 = vector.broadcast %cst_14 : f32 to vector<8x128xf32>
    %c0_15 = arith.constant 0 : index
    %c384_16 = arith.constant 384 : index
    %20 = vector.load %arg8[%c0_15, %c384_16] : memref<8x512xf32, #tpu.memory_space<vmem>>, vector<8x128xf32>
    tpu.vector_store %arg8[%c0_15, %c384_16], %19 {strides = array<i32>} : memref<8x512xf32, #tpu.memory_space<vmem>>, vector<8x128xf32>,
    %cst_17 = arith.constant 1.000000e+00 : f32
    %21 = vector.broadcast %cst_17 : f32 to vector<1x256xf32>
    %c3 = arith.constant 3 : index
    %c128 = arith.constant 128 : index
    %22 = vector.load %arg8[%c3, %c128] : memref<8x512xf32, #tpu.memory_space<vmem>>, vector<1x256xf32>
    tpu.vector_store %arg8[%c3, %c128], %21 {strides = array<i32>} : memref<8x512xf32, #tpu.memory_space<vmem>>, vector<1x256xf32>,
    %cst_18 = arith.constant 0.000000e+00 : f32
    %23 = vector.broadcast %cst_18 : f32 to vector<4x256xf32>
    %c4 = arith.constant 4 : index
    %c128_19 = arith.constant 128 : index
    %24 = vector.load %arg8[%c4, %c128_19] : memref<8x512xf32, #tpu.memory_space<vmem>>, vector<4x256xf32>
    tpu.vector_store %arg8[%c4, %c128_19], %23 {strides = array<i32>} : memref<8x512xf32, #tpu.memory_space<vmem>>, vector<4x256xf32>,
    %c0_20 = arith.constant 0 : index
    %c0_21 = arith.constant 0 : index
    %25 = vector.load %arg6[%c0_20, %c0_21] : memref<1x256xf32, #tpu.memory_space<vmem>>, vector<1x256xf32>
    %c0_22 = arith.constant 0 : index
    %c128_23 = arith.constant 128 : index
    %26 = vector.load %arg7[%c0_22, %c128_23] : memref<1x512xf32, #tpu.memory_space<vmem>>, vector<1x256xf32>
    tpu.vector_store %arg7[%c0_22, %c128_23], %25 {strides = array<i32>} : memref<1x512xf32, #tpu.memory_space<vmem>>, vector<1x256xf32>,
    %c0_24 = arith.constant 0 : index
    %c112 = arith.constant 112 : index
    %27 = vector.load %arg7[%c0_24, %c112] : memref<1x512xf32, #tpu.memory_space<vmem>>, vector<1x256xf32>
    %c0_25 = arith.constant 0 : index
    %c144 = arith.constant 144 : index
    %28 = vector.load %arg7[%c0_25, %c144] : memref<1x512xf32, #tpu.memory_space<vmem>>, vector<1x256xf32>
    %c0_26 = arith.constant 0 : index
    %c127 = arith.constant 127 : index
    %29 = vector.load %arg7[%c0_26, %c127] : memref<1x512xf32, #tpu.memory_space<vmem>>, vector<1x256xf32>
    %cst_27 = arith.constant 0x7F800000 : f32
    %30 = vector.broadcast %cst_27 : f32 to vector<1x256xf32>
    %31 = arith.select %4, %29, %30 : vector<1x256xi1>, vector<1x256xf32>
    %c0_28 = arith.constant 0 : index
    %c129 = arith.constant 129 : index
    %32 = vector.load %arg7[%c0_28, %c129] : memref<1x512xf32, #tpu.memory_space<vmem>>, vector<1x256xf32>
    %cst_29 = arith.constant 0x7F800000 : f32
    %33 = vector.broadcast %cst_29 : f32 to vector<1x256xf32>
    %34 = arith.select %6, %32, %33 : vector<1x256xi1>, vector<1x256xf32>
    %35 = arith.minimumf %27, %28 : vector<1x256xf32>
    %36 = arith.minimumf %31, %34 : vector<1x256xf32>
    %37 = arith.minimumf %35, %36 : vector<1x256xf32>
    %38 = arith.minimumf %37, %25 : vector<1x256xf32>
    %c0_30 = arith.constant 0 : index
    %c128_31 = arith.constant 128 : index
    %39 = vector.load %arg7[%c0_30, %c128_31] : memref<1x512xf32, #tpu.memory_space<vmem>>, vector<1x256xf32>
    tpu.vector_store %arg7[%c0_30, %c128_31], %38 {strides = array<i32>} : memref<1x512xf32, #tpu.memory_space<vmem>>, vector<1x256xf32>,
    %c0_32 = arith.constant 0 : index
    %c112_33 = arith.constant 112 : index
    %40 = vector.load %arg7[%c0_32, %c112_33] : memref<1x512xf32, #tpu.memory_space<vmem>>, vector<1x256xf32>
    %c0_34 = arith.constant 0 : index
    %c144_35 = arith.constant 144 : index
    %41 = vector.load %arg7[%c0_34, %c144_35] : memref<1x512xf32, #tpu.memory_space<vmem>>, vector<1x256xf32>
    %c0_36 = arith.constant 0 : index
    %c127_37 = arith.constant 127 : index
    %42 = vector.load %arg7[%c0_36, %c127_37] : memref<1x512xf32, #tpu.memory_space<vmem>>, vector<1x256xf32>
    %cst_38 = arith.constant 0x7F800000 : f32
    %43 = vector.broadcast %cst_38 : f32 to vector<1x256xf32>
    %44 = arith.select %4, %42, %43 : vector<1x256xi1>, vector<1x256xf32>
    %c0_39 = arith.constant 0 : index
    %c129_40 = arith.constant 129 : index
    %45 = vector.load %arg7[%c0_39, %c129_40] : memref<1x512xf32, #tpu.memory_space<vmem>>, vector<1x256xf32>
    %cst_41 = arith.constant 0x7F800000 : f32
    %46 = vector.broadcast %cst_41 : f32 to vector<1x256xf32>
    %47 = arith.select %6, %45, %46 : vector<1x256xi1>, vector<1x256xf32>
    %48 = arith.minimumf %40, %41 : vector<1x256xf32>
    %49 = arith.minimumf %44, %47 : vector<1x256xf32>
    %50 = arith.minimumf %48, %49 : vector<1x256xf32>
    %51 = arith.minimumf %50, %38 : vector<1x256xf32>
    %52 = arith.subf %25, %51 : vector<1x256xf32>
    %c0_42 = arith.constant 0 : index
    %c0_43 = arith.constant 0 : index
    %c0_44 = arith.constant 0 : index
    %53 = vector.load %arg5[%c0_42, %c0_43, %c0_44] : memref<1x1x256xf32, #tpu.memory_space<vmem>>, vector<1x1x256xf32>
    %54 = vector.shape_cast %53 : vector<1x1x256xf32> to vector<1x256xf32>
    %c0_45 = arith.constant 0 : index
    %c128_46 = arith.constant 128 : index
    %55 = vector.load %arg8[%c0_45, %c128_46] : memref<8x512xf32, #tpu.memory_space<vmem>>, vector<1x256xf32>
    tpu.vector_store %arg8[%c0_45, %c128_46], %52 {strides = array<i32>} : memref<8x512xf32, #tpu.memory_space<vmem>>, vector<1x256xf32>,
    %c1 = arith.constant 1 : index
    %c128_47 = arith.constant 128 : index
    %56 = vector.load %arg8[%c1, %c128_47] : memref<8x512xf32, #tpu.memory_space<vmem>>, vector<1x256xf32>
    tpu.vector_store %arg8[%c1, %c128_47], %25 {strides = array<i32>} : memref<8x512xf32, #tpu.memory_space<vmem>>, vector<1x256xf32>,
    %c2 = arith.constant 2 : index
    %c128_48 = arith.constant 128 : index
    %57 = vector.load %arg8[%c2, %c128_48] : memref<8x512xf32, #tpu.memory_space<vmem>>, vector<1x256xf32>
    tpu.vector_store %arg8[%c2, %c128_48], %54 {strides = array<i32>} : memref<8x512xf32, #tpu.memory_space<vmem>>, vector<1x256xf32>,
    %c0_49 = arith.constant 0 : index
    %c0_50 = arith.constant 0 : index
    %58 = vector.load %arg6[%c0_49, %c0_50] : memref<1x256xf32, #tpu.memory_space<vmem>>, vector<1x256xf32>
    tpu.vector_store %arg6[%c0_49, %c0_50], %51 {strides = array<i32>} : memref<1x256xf32, #tpu.memory_space<vmem>>, vector<1x256xf32>,
    %c0_51 = arith.constant 0 : index
    %c111 = arith.constant 111 : index
    %59 = vector.load %arg8[%c0_51, %c111] : memref<8x512xf32, #tpu.memory_space<vmem>>, vector<8x256xf32>
    %cst_52 = arith.constant 0.000000e+00 : f32
    %60 = vector.shape_cast %4 : vector<1x256xi1> to vector<1x256xi1>
    %61 = vector.broadcast %60 : vector<1x256xi1> to vector<8x256xi1>
    %62 = vector.broadcast %cst_52 : f32 to vector<8x256xf32>
    %63 = arith.select %61, %59, %62 : vector<8x256xi1>, vector<8x256xf32>
    %c0_53 = arith.constant 0 : index
    %c112_54 = arith.constant 112 : index
    %64 = vector.load %arg8[%c0_53, %c112_54] : memref<8x512xf32, #tpu.memory_space<vmem>>, vector<8x256xf32>
    %c0_55 = arith.constant 0 : index
    %c113 = arith.constant 113 : index
    %65 = vector.load %arg8[%c0_55, %c113] : memref<8x512xf32, #tpu.memory_space<vmem>>, vector<8x256xf32>
    %cst_56 = arith.constant 0.000000e+00 : f32
    %66 = vector.shape_cast %6 : vector<1x256xi1> to vector<1x256xi1>
    %67 = vector.broadcast %66 : vector<1x256xi1> to vector<8x256xi1>
    %68 = vector.broadcast %cst_56 : f32 to vector<8x256xf32>
    %69 = arith.select %67, %65, %68 : vector<8x256xi1>, vector<8x256xf32>
    %c0_57 = arith.constant 0 : index
    %c127_58 = arith.constant 127 : index
    %70 = vector.load %arg8[%c0_57, %c127_58] : memref<8x512xf32, #tpu.memory_space<vmem>>, vector<8x256xf32>
    %cst_59 = arith.constant 0.000000e+00 : f32
    %71 = vector.shape_cast %4 : vector<1x256xi1> to vector<1x256xi1>
    %72 = vector.broadcast %71 : vector<1x256xi1> to vector<8x256xi1>
    %73 = vector.broadcast %cst_59 : f32 to vector<8x256xf32>
    %74 = arith.select %72, %70, %73 : vector<8x256xi1>, vector<8x256xf32>
    %c0_60 = arith.constant 0 : index
    %c128_61 = arith.constant 128 : index
    %75 = vector.load %arg8[%c0_60, %c128_61] : memref<8x512xf32, #tpu.memory_space<vmem>>, vector<8x256xf32>
    %c0_62 = arith.constant 0 : index
    %c129_63 = arith.constant 129 : index
    %76 = vector.load %arg8[%c0_62, %c129_63] : memref<8x512xf32, #tpu.memory_space<vmem>>, vector<8x256xf32>
    %cst_64 = arith.constant 0.000000e+00 : f32
    %77 = vector.shape_cast %6 : vector<1x256xi1> to vector<1x256xi1>
    %78 = vector.broadcast %77 : vector<1x256xi1> to vector<8x256xi1>
    %79 = vector.broadcast %cst_64 : f32 to vector<8x256xf32>
    %80 = arith.select %78, %76, %79 : vector<8x256xi1>, vector<8x256xf32>
    %c0_65 = arith.constant 0 : index
    %c143 = arith.constant 143 : index
    %81 = vector.load %arg8[%c0_65, %c143] : memref<8x512xf32, #tpu.memory_space<vmem>>, vector<8x256xf32>
    %cst_66 = arith.constant 0.000000e+00 : f32
    %82 = vector.shape_cast %4 : vector<1x256xi1> to vector<1x256xi1>
    %83 = vector.broadcast %82 : vector<1x256xi1> to vector<8x256xi1>
    %84 = vector.broadcast %cst_66 : f32 to vector<8x256xf32>
    %85 = arith.select %83, %81, %84 : vector<8x256xi1>, vector<8x256xf32>
    %c0_67 = arith.constant 0 : index
    %c144_68 = arith.constant 144 : index
    %86 = vector.load %arg8[%c0_67, %c144_68] : memref<8x512xf32, #tpu.memory_space<vmem>>, vector<8x256xf32>
    %c0_69 = arith.constant 0 : index
    %c145 = arith.constant 145 : index
    %87 = vector.load %arg8[%c0_69, %c145] : memref<8x512xf32, #tpu.memory_space<vmem>>, vector<8x256xf32>
    %cst_70 = arith.constant 0.000000e+00 : f32
    %88 = vector.shape_cast %6 : vector<1x256xi1> to vector<1x256xi1>
    %89 = vector.broadcast %88 : vector<1x256xi1> to vector<8x256xi1>
    %90 = vector.broadcast %cst_70 : f32 to vector<8x256xf32>
    %91 = arith.select %89, %87, %90 : vector<8x256xi1>, vector<8x256xf32>
    %92 = tpu.concatenate %63, %64, %69, %74, %75, %80, %85, %86, %91 in 0 : vector<8x256xf32>, vector<8x256xf32>, vector<8x256xf32>, vector<8x256xf32>, vector<8x256xf32>, vector<8x256xf32>, vector<8x256xf32>, vector<8x256xf32>, vector<8x256xf32> -> vector<72x256xf32>
    %c0_71 = arith.constant 0 : index
    %c0_72 = arith.constant 0 : index
    %93 = vector.load %arg2[%c0_71, %c0_72] : memref<32x72xf32, #tpu.memory_space<vmem>>, vector<32x72xf32>
    %cst_73 = arith.constant dense<0.000000e+00> : vector<32x256xf32>
    %94 = tpu.matmul %93, %92, %cst_73 {dimension_numbers = #tpu.dot_dimension_numbers<[1], [0], [0], [1], [0, 0, 1, 1], [], []>} : vector<32x72xf32>, vector<72x256xf32>, vector<32x256xf32> -> vector<32x256xf32>
    %cst_74 = arith.constant 0.000000e+00 : f32
    %95 = vector.broadcast %cst_74 : f32 to vector<32x256xf32>
    %96 = arith.maximumf %94, %95 : vector<32x256xf32>
    %c0_75 = arith.constant 0 : index
    %c0_76 = arith.constant 0 : index
    %97 = vector.load %arg3[%c0_75, %c0_76] : memref<1x32xf32, #tpu.memory_space<vmem>>, vector<1x32xf32>
    %cst_77 = arith.constant dense<0.000000e+00> : vector<1x256xf32>
    %98 = tpu.matmul %97, %96, %cst_77 {dimension_numbers = #tpu.dot_dimension_numbers<[1], [0], [0], [1], [0, 0, 1, 1], [], []>} : vector<1x32xf32>, vector<32x256xf32>, vector<1x256xf32> -> vector<1x256xf32>
    %c0_78 = arith.constant 0 : index
    %c0_79 = arith.constant 0 : index
    %99 = vector.load %arg4[%c0_78, %c0_79] : memref<1x1xf32, #tpu.memory_space<vmem>>, vector<1x1xf32>
    %100 = vector.broadcast %99 : vector<1x1xf32> to vector<1x256xf32>
    %101 = arith.addf %98, %100 : vector<1x256xf32>
    %c0_80 = arith.constant 0 : index
    %c128_81 = arith.constant 128 : index
    %102 = vector.load %arg8[%c0_80, %c128_81] : memref<8x512xf32, #tpu.memory_space<vmem>>, vector<1x256xf32>
    %cst_82 = arith.constant 1.000000e+00 : f32
    %103 = vector.broadcast %cst_82 : f32 to vector<1x256xf32>
    %104 = arith.cmpf oeq, %102, %103 : vector<1x256xf32>
    %105 = arith.negf %101 : vector<1x256xf32>
    %106 = math.exp %105 : vector<1x256xf32>
    %cst_83 = arith.constant 1.000000e+00 : f32
    %107 = vector.broadcast %cst_83 : f32 to vector<1x256xf32>
    %108 = arith.addf %107, %106 : vector<1x256xf32>
    %109 = arith.divf %107, %108 : vector<1x256xf32>
    %cst_84 = arith.constant 0.000000e+00 : f32
    %110 = vector.broadcast %cst_84 : f32 to vector<1x256xf32>
    %111 = arith.select %104, %109, %110 : vector<1x256xi1>, vector<1x256xf32>
    %c0_85 = arith.constant 0 : index
    %c0_86 = arith.constant 0 : index
    %c0_87 = arith.constant 0 : index
    %112 = vector.load %arg5[%c0_85, %c0_86, %c0_87] : memref<1x1x256xf32, #tpu.memory_space<vmem>>, vector<1x1x256xf32>
    %113 = vector.shape_cast %112 : vector<1x1x256xf32> to vector<1x256xf32>
    %114 = arith.subf %113, %111 : vector<1x256xf32>
    %c0_88 = arith.constant 0 : index
    %c0_89 = arith.constant 0 : index
    %c0_90 = arith.constant 0 : index
    %115 = vector.load %arg5[%c0_88, %c0_89, %c0_90] : memref<1x1x256xf32, #tpu.memory_space<vmem>>, vector<1x1x256xf32>
    %116 = vector.shape_cast %115 : vector<1x1x256xf32> to vector<1x256xf32>
    %117 = vector.shape_cast %114 : vector<1x256xf32> to vector<1x1x256xf32>
    tpu.vector_store %arg5[%c0_88, %c0_89, %c0_90], %117 {strides = array<i32>} : memref<1x1x256xf32, #tpu.memory_space<vmem>>, vector<1x1x256xf32>,
    %c0_91 = arith.constant 0 : index
    %c0_92 = arith.constant 0 : index
    %118 = vector.load %arg6[%c0_91, %c0_92] : memref<1x256xf32, #tpu.memory_space<vmem>>, vector<1x256xf32>
    %c0_93 = arith.constant 0 : index
    %c128_94 = arith.constant 128 : index
    %119 = vector.load %arg7[%c0_93, %c128_94] : memref<1x512xf32, #tpu.memory_space<vmem>>, vector<1x256xf32>
    tpu.vector_store %arg7[%c0_93, %c128_94], %118 {strides = array<i32>} : memref<1x512xf32, #tpu.memory_space<vmem>>, vector<1x256xf32>,
    %c0_95 = arith.constant 0 : index
    %c112_96 = arith.constant 112 : index
    %120 = vector.load %arg7[%c0_95, %c112_96] : memref<1x512xf32, #tpu.memory_space<vmem>>, vector<1x256xf32>
    %c0_97 = arith.constant 0 : index
    %c144_98 = arith.constant 144 : index
    %121 = vector.load %arg7[%c0_97, %c144_98] : memref<1x512xf32, #tpu.memory_space<vmem>>, vector<1x256xf32>
    %c0_99 = arith.constant 0 : index
    %c127_100 = arith.constant 127 : index
    %122 = vector.load %arg7[%c0_99, %c127_100] : memref<1x512xf32, #tpu.memory_space<vmem>>, vector<1x256xf32>
    %cst_101 = arith.constant 0x7F800000 : f32
    %123 = vector.broadcast %cst_101 : f32 to vector<1x256xf32>
    %124 = arith.select %4, %122, %123 : vector<1x256xi1>, vector<1x256xf32>
    %c0_102 = arith.constant 0 : index
    %c129_103 = arith.constant 129 : index
    %125 = vector.load %arg7[%c0_102, %c129_103] : memref<1x512xf32, #tpu.memory_space<vmem>>, vector<1x256xf32>
    %cst_104 = arith.constant 0x7F800000 : f32
    %126 = vector.broadcast %cst_104 : f32 to vector<1x256xf32>
    %127 = arith.select %6, %125, %126 : vector<1x256xi1>, vector<1x256xf32>
    %128 = arith.minimumf %120, %121 : vector<1x256xf32>
    %129 = arith.minimumf %124, %127 : vector<1x256xf32>
    %130 = arith.minimumf %128, %129 : vector<1x256xf32>
    %131 = arith.minimumf %130, %118 : vector<1x256xf32>
    %c0_105 = arith.constant 0 : index
    %c128_106 = arith.constant 128 : index
    %132 = vector.load %arg7[%c0_105, %c128_106] : memref<1x512xf32, #tpu.memory_space<vmem>>, vector<1x256xf32>
    tpu.vector_store %arg7[%c0_105, %c128_106], %131 {strides = array<i32>} : memref<1x512xf32, #tpu.memory_space<vmem>>, vector<1x256xf32>,
    %c0_107 = arith.constant 0 : index
    %c112_108 = arith.constant 112 : index
    %133 = vector.load %arg7[%c0_107, %c112_108] : memref<1x512xf32, #tpu.memory_space<vmem>>, vector<1x256xf32>
    %c0_109 = arith.constant 0 : index
    %c144_110 = arith.constant 144 : index
    %134 = vector.load %arg7[%c0_109, %c144_110] : memref<1x512xf32, #tpu.memory_space<vmem>>, vector<1x256xf32>
    %c0_111 = arith.constant 0 : index
    %c127_112 = arith.constant 127 : index
    %135 = vector.load %arg7[%c0_111, %c127_112] : memref<1x512xf32, #tpu.memory_space<vmem>>, vector<1x256xf32>
    %cst_113 = arith.constant 0x7F800000 : f32
    %136 = vector.broadcast %cst_113 : f32 to vector<1x256xf32>
    %137 = arith.select %4, %135, %136 : vector<1x256xi1>, vector<1x256xf32>
    %c0_114 = arith.constant 0 : index
    %c129_115 = arith.constant 129 : index
    %138 = vector.load %arg7[%c0_114, %c129_115] : memref<1x512xf32, #tpu.memory_space<vmem>>, vector<1x256xf32>
    %cst_116 = arith.constant 0x7F800000 : f32
    %139 = vector.broadcast %cst_116 : f32 to vector<1x256xf32>
    %140 = arith.select %6, %138, %139 : vector<1x256xi1>, vector<1x256xf32>
    %141 = arith.minimumf %133, %134 : vector<1x256xf32>
    %142 = arith.minimumf %137, %140 : vector<1x256xf32>
    %143 = arith.minimumf %141, %142 : vector<1x256xf32>
    %144 = arith.minimumf %143, %131 : vector<1x256xf32>
    %145 = arith.subf %118, %144 : vector<1x256xf32>
    %c0_117 = arith.constant 0 : index
    %c0_118 = arith.constant 0 : index
    %c0_119 = arith.constant 0 : index
    %146 = vector.load %arg5[%c0_117, %c0_118, %c0_119] : memref<1x1x256xf32, #tpu.memory_space<vmem>>, vector<1x1x256xf32>
    %147 = vector.shape_cast %146 : vector<1x1x256xf32> to vector<1x256xf32>
    %c0_120 = arith.constant 0 : index
    %c128_121 = arith.constant 128 : index
    %148 = vector.load %arg8[%c0_120, %c128_121] : memref<8x512xf32, #tpu.memory_space<vmem>>, vector<1x256xf32>
    tpu.vector_store %arg8[%c0_120, %c128_121], %145 {strides = array<i32>} : memref<8x512xf32, #tpu.memory_space<vmem>>, vector<1x256xf32>,
    %c1_122 = arith.constant 1 : index
    %c128_123 = arith.constant 128 : index
    %149 = vector.load %arg8[%c1_122, %c128_123] : memref<8x512xf32, #tpu.memory_space<vmem>>, vector<1x256xf32>
    tpu.vector_store %arg8[%c1_122, %c128_123], %118 {strides = array<i32>} : memref<8x512xf32, #tpu.memory_space<vmem>>, vector<1x256xf32>,
    %c2_124 = arith.constant 2 : index
    %c128_125 = arith.constant 128 : index
    %150 = vector.load %arg8[%c2_124, %c128_125] : memref<8x512xf32, #tpu.memory_space<vmem>>, vector<1x256xf32>
    tpu.vector_store %arg8[%c2_124, %c128_125], %147 {strides = array<i32>} : memref<8x512xf32, #tpu.memory_space<vmem>>, vector<1x256xf32>,
    %c0_126 = arith.constant 0 : index
    %c0_127 = arith.constant 0 : index
    %151 = vector.load %arg6[%c0_126, %c0_127] : memref<1x256xf32, #tpu.memory_space<vmem>>, vector<1x256xf32>
    tpu.vector_store %arg6[%c0_126, %c0_127], %144 {strides = array<i32>} : memref<1x256xf32, #tpu.memory_space<vmem>>, vector<1x256xf32>,
    %c0_128 = arith.constant 0 : index
    %c111_129 = arith.constant 111 : index
    %152 = vector.load %arg8[%c0_128, %c111_129] : memref<8x512xf32, #tpu.memory_space<vmem>>, vector<8x256xf32>
    %cst_130 = arith.constant 0.000000e+00 : f32
    %153 = vector.shape_cast %4 : vector<1x256xi1> to vector<1x256xi1>
    %154 = vector.broadcast %153 : vector<1x256xi1> to vector<8x256xi1>
    %155 = vector.broadcast %cst_130 : f32 to vector<8x256xf32>
    %156 = arith.select %154, %152, %155 : vector<8x256xi1>, vector<8x256xf32>
    %c0_131 = arith.constant 0 : index
    %c112_132 = arith.constant 112 : index
    %157 = vector.load %arg8[%c0_131, %c112_132] : memref<8x512xf32, #tpu.memory_space<vmem>>, vector<8x256xf32>
    %c0_133 = arith.constant 0 : index
    %c113_134 = arith.constant 113 : index
    %158 = vector.load %arg8[%c0_133, %c113_134] : memref<8x512xf32, #tpu.memory_space<vmem>>, vector<8x256xf32>
    %cst_135 = arith.constant 0.000000e+00 : f32
    %159 = vector.shape_cast %6 : vector<1x256xi1> to vector<1x256xi1>
    %160 = vector.broadcast %159 : vector<1x256xi1> to vector<8x256xi1>
    %161 = vector.broadcast %cst_135 : f32 to vector<8x256xf32>
    %162 = arith.select %160, %158, %161 : vector<8x256xi1>, vector<8x256xf32>
    %c0_136 = arith.constant 0 : index
    %c127_137 = arith.constant 127 : index
    %163 = vector.load %arg8[%c0_136, %c127_137] : memref<8x512xf32, #tpu.memory_space<vmem>>, vector<8x256xf32>
    %cst_138 = arith.constant 0.000000e+00 : f32
    %164 = vector.shape_cast %4 : vector<1x256xi1> to vector<1x256xi1>
    %165 = vector.broadcast %164 : vector<1x256xi1> to vector<8x256xi1>
    %166 = vector.broadcast %cst_138 : f32 to vector<8x256xf32>
    %167 = arith.select %165, %163, %166 : vector<8x256xi1>, vector<8x256xf32>
    %c0_139 = arith.constant 0 : index
    %c128_140 = arith.constant 128 : index
    %168 = vector.load %arg8[%c0_139, %c128_140] : memref<8x512xf32, #tpu.memory_space<vmem>>, vector<8x256xf32>
    %c0_141 = arith.constant 0 : index
    %c129_142 = arith.constant 129 : index
    %169 = vector.load %arg8[%c0_141, %c129_142] : memref<8x512xf32, #tpu.memory_space<vmem>>, vector<8x256xf32>
    %cst_143 = arith.constant 0.000000e+00 : f32
    %170 = vector.shape_cast %6 : vector<1x256xi1> to vector<1x256xi1>
    %171 = vector.broadcast %170 : vector<1x256xi1> to vector<8x256xi1>
    %172 = vector.broadcast %cst_143 : f32 to vector<8x256xf32>
    %173 = arith.select %171, %169, %172 : vector<8x256xi1>, vector<8x256xf32>
    %c0_144 = arith.constant 0 : index
    %c143_145 = arith.constant 143 : index
    %174 = vector.load %arg8[%c0_144, %c143_145] : memref<8x512xf32, #tpu.memory_space<vmem>>, vector<8x256xf32>
    %cst_146 = arith.constant 0.000000e+00 : f32
    %175 = vector.shape_cast %4 : vector<1x256xi1> to vector<1x256xi1>
    %176 = vector.broadcast %175 : vector<1x256xi1> to vector<8x256xi1>
    %177 = vector.broadcast %cst_146 : f32 to vector<8x256xf32>
    %178 = arith.select %176, %174, %177 : vector<8x256xi1>, vector<8x256xf32>
    %c0_147 = arith.constant 0 : index
    %c144_148 = arith.constant 144 : index
    %179 = vector.load %arg8[%c0_147, %c144_148] : memref<8x512xf32, #tpu.memory_space<vmem>>, vector<8x256xf32>
    %c0_149 = arith.constant 0 : index
    %c145_150 = arith.constant 145 : index
    %180 = vector.load %arg8[%c0_149, %c145_150] : memref<8x512xf32, #tpu.memory_space<vmem>>, vector<8x256xf32>
    %cst_151 = arith.constant 0.000000e+00 : f32
    %181 = vector.shape_cast %6 : vector<1x256xi1> to vector<1x256xi1>
    %182 = vector.broadcast %181 : vector<1x256xi1> to vector<8x256xi1>
    %183 = vector.broadcast %cst_151 : f32 to vector<8x256xf32>
    %184 = arith.select %182, %180, %183 : vector<8x256xi1>, vector<8x256xf32>
    %185 = tpu.concatenate %156, %157, %162, %167, %168, %173, %178, %179, %184 in 0 : vector<8x256xf32>, vector<8x256xf32>, vector<8x256xf32>, vector<8x256xf32>, vector<8x256xf32>, vector<8x256xf32>, vector<8x256xf32>, vector<8x256xf32>, vector<8x256xf32> -> vector<72x256xf32>
    %c0_152 = arith.constant 0 : index
    %c0_153 = arith.constant 0 : index
    %186 = vector.load %arg2[%c0_152, %c0_153] : memref<32x72xf32, #tpu.memory_space<vmem>>, vector<32x72xf32>
    %cst_154 = arith.constant dense<0.000000e+00> : vector<32x256xf32>
    %187 = tpu.matmul %186, %185, %cst_154 {dimension_numbers = #tpu.dot_dimension_numbers<[1], [0], [0], [1], [0, 0, 1, 1], [], []>} : vector<32x72xf32>, vector<72x256xf32>, vector<32x256xf32> -> vector<32x256xf32>
    %cst_155 = arith.constant 0.000000e+00 : f32
    %188 = vector.broadcast %cst_155 : f32 to vector<32x256xf32>
    %189 = arith.maximumf %187, %188 : vector<32x256xf32>
    %c0_156 = arith.constant 0 : index
    %c0_157 = arith.constant 0 : index
    %190 = vector.load %arg3[%c0_156, %c0_157] : memref<1x32xf32, #tpu.memory_space<vmem>>, vector<1x32xf32>
    %cst_158 = arith.constant dense<0.000000e+00> : vector<1x256xf32>
    %191 = tpu.matmul %190, %189, %cst_158 {dimension_numbers = #tpu.dot_dimension_numbers<[1], [0], [0], [1], [0, 0, 1, 1], [], []>} : vector<1x32xf32>, vector<32x256xf32>, vector<1x256xf32> -> vector<1x256xf32>
    %c0_159 = arith.constant 0 : index
    %c0_160 = arith.constant 0 : index
    %192 = vector.load %arg4[%c0_159, %c0_160] : memref<1x1xf32, #tpu.memory_space<vmem>>, vector<1x1xf32>
    %193 = vector.broadcast %192 : vector<1x1xf32> to vector<1x256xf32>
    %194 = arith.addf %191, %193 : vector<1x256xf32>
    %c0_161 = arith.constant 0 : index
    %c128_162 = arith.constant 128 : index
    %195 = vector.load %arg8[%c0_161, %c128_162] : memref<8x512xf32, #tpu.memory_space<vmem>>, vector<1x256xf32>
    %cst_163 = arith.constant 1.000000e+00 : f32
    %196 = vector.broadcast %cst_163 : f32 to vector<1x256xf32>
    %197 = arith.cmpf oeq, %195, %196 : vector<1x256xf32>
    %198 = arith.negf %194 : vector<1x256xf32>
    %199 = math.exp %198 : vector<1x256xf32>
    %cst_164 = arith.constant 1.000000e+00 : f32
    %200 = vector.broadcast %cst_164 : f32 to vector<1x256xf32>
    %201 = arith.addf %200, %199 : vector<1x256xf32>
    %202 = arith.divf %200, %201 : vector<1x256xf32>
    %cst_165 = arith.constant 0.000000e+00 : f32
    %203 = vector.broadcast %cst_165 : f32 to vector<1x256xf32>
    %204 = arith.select %197, %202, %203 : vector<1x256xi1>, vector<1x256xf32>
    %c0_166 = arith.constant 0 : index
    %c0_167 = arith.constant 0 : index
    %c0_168 = arith.constant 0 : index
    %205 = vector.load %arg5[%c0_166, %c0_167, %c0_168] : memref<1x1x256xf32, #tpu.memory_space<vmem>>, vector<1x1x256xf32>
    %206 = vector.shape_cast %205 : vector<1x1x256xf32> to vector<1x256xf32>
    %207 = arith.subf %206, %204 : vector<1x256xf32>
    %c0_169 = arith.constant 0 : index
    %c0_170 = arith.constant 0 : index
    %c0_171 = arith.constant 0 : index
    %208 = vector.load %arg5[%c0_169, %c0_170, %c0_171] : memref<1x1x256xf32, #tpu.memory_space<vmem>>, vector<1x1x256xf32>
    %209 = vector.shape_cast %208 : vector<1x1x256xf32> to vector<1x256xf32>
    %210 = vector.shape_cast %207 : vector<1x256xf32> to vector<1x1x256xf32>
    tpu.vector_store %arg5[%c0_169, %c0_170, %c0_171], %210 {strides = array<i32>} : memref<1x1x256xf32, #tpu.memory_space<vmem>>, vector<1x1x256xf32>,
    %c0_172 = arith.constant 0 : index
    %c0_173 = arith.constant 0 : index
    %211 = vector.load %arg6[%c0_172, %c0_173] : memref<1x256xf32, #tpu.memory_space<vmem>>, vector<1x256xf32>
    %c0_174 = arith.constant 0 : index
    %c128_175 = arith.constant 128 : index
    %212 = vector.load %arg7[%c0_174, %c128_175] : memref<1x512xf32, #tpu.memory_space<vmem>>, vector<1x256xf32>
    tpu.vector_store %arg7[%c0_174, %c128_175], %211 {strides = array<i32>} : memref<1x512xf32, #tpu.memory_space<vmem>>, vector<1x256xf32>,
    %c0_176 = arith.constant 0 : index
    %c112_177 = arith.constant 112 : index
    %213 = vector.load %arg7[%c0_176, %c112_177] : memref<1x512xf32, #tpu.memory_space<vmem>>, vector<1x256xf32>
    %c0_178 = arith.constant 0 : index
    %c144_179 = arith.constant 144 : index
    %214 = vector.load %arg7[%c0_178, %c144_179] : memref<1x512xf32, #tpu.memory_space<vmem>>, vector<1x256xf32>
    %c0_180 = arith.constant 0 : index
    %c127_181 = arith.constant 127 : index
    %215 = vector.load %arg7[%c0_180, %c127_181] : memref<1x512xf32, #tpu.memory_space<vmem>>, vector<1x256xf32>
    %cst_182 = arith.constant 0x7F800000 : f32
    %216 = vector.broadcast %cst_182 : f32 to vector<1x256xf32>
    %217 = arith.select %4, %215, %216 : vector<1x256xi1>, vector<1x256xf32>
    %c0_183 = arith.constant 0 : index
    %c129_184 = arith.constant 129 : index
    %218 = vector.load %arg7[%c0_183, %c129_184] : memref<1x512xf32, #tpu.memory_space<vmem>>, vector<1x256xf32>
    %cst_185 = arith.constant 0x7F800000 : f32
    %219 = vector.broadcast %cst_185 : f32 to vector<1x256xf32>
    %220 = arith.select %6, %218, %219 : vector<1x256xi1>, vector<1x256xf32>
    %221 = arith.minimumf %213, %214 : vector<1x256xf32>
    %222 = arith.minimumf %217, %220 : vector<1x256xf32>
    %223 = arith.minimumf %221, %222 : vector<1x256xf32>
    %224 = arith.minimumf %223, %211 : vector<1x256xf32>
    %c0_186 = arith.constant 0 : index
    %c128_187 = arith.constant 128 : index
    %225 = vector.load %arg7[%c0_186, %c128_187] : memref<1x512xf32, #tpu.memory_space<vmem>>, vector<1x256xf32>
    tpu.vector_store %arg7[%c0_186, %c128_187], %224 {strides = array<i32>} : memref<1x512xf32, #tpu.memory_space<vmem>>, vector<1x256xf32>,
    %c0_188 = arith.constant 0 : index
    %c112_189 = arith.constant 112 : index
    %226 = vector.load %arg7[%c0_188, %c112_189] : memref<1x512xf32, #tpu.memory_space<vmem>>, vector<1x256xf32>
    %c0_190 = arith.constant 0 : index
    %c144_191 = arith.constant 144 : index
    %227 = vector.load %arg7[%c0_190, %c144_191] : memref<1x512xf32, #tpu.memory_space<vmem>>, vector<1x256xf32>
    %c0_192 = arith.constant 0 : index
    %c127_193 = arith.constant 127 : index
    %228 = vector.load %arg7[%c0_192, %c127_193] : memref<1x512xf32, #tpu.memory_space<vmem>>, vector<1x256xf32>
    %cst_194 = arith.constant 0x7F800000 : f32
    %229 = vector.broadcast %cst_194 : f32 to vector<1x256xf32>
    %230 = arith.select %4, %228, %229 : vector<1x256xi1>, vector<1x256xf32>
    %c0_195 = arith.constant 0 : index
    %c129_196 = arith.constant 129 : index
    %231 = vector.load %arg7[%c0_195, %c129_196] : memref<1x512xf32, #tpu.memory_space<vmem>>, vector<1x256xf32>
    %cst_197 = arith.constant 0x7F800000 : f32
    %232 = vector.broadcast %cst_197 : f32 to vector<1x256xf32>
    %233 = arith.select %6, %231, %232 : vector<1x256xi1>, vector<1x256xf32>
    %234 = arith.minimumf %226, %227 : vector<1x256xf32>
    %235 = arith.minimumf %230, %233 : vector<1x256xf32>
    %236 = arith.minimumf %234, %235 : vector<1x256xf32>
    %237 = arith.minimumf %236, %224 : vector<1x256xf32>
    %238 = arith.subf %211, %237 : vector<1x256xf32>
    %c0_198 = arith.constant 0 : index
    %c0_199 = arith.constant 0 : index
    %c0_200 = arith.constant 0 : index
    %239 = vector.load %arg5[%c0_198, %c0_199, %c0_200] : memref<1x1x256xf32, #tpu.memory_space<vmem>>, vector<1x1x256xf32>
    %240 = vector.shape_cast %239 : vector<1x1x256xf32> to vector<1x256xf32>
    %c0_201 = arith.constant 0 : index
    %c128_202 = arith.constant 128 : index
    %241 = vector.load %arg8[%c0_201, %c128_202] : memref<8x512xf32, #tpu.memory_space<vmem>>, vector<1x256xf32>
    tpu.vector_store %arg8[%c0_201, %c128_202], %238 {strides = array<i32>} : memref<8x512xf32, #tpu.memory_space<vmem>>, vector<1x256xf32>,
    %c1_203 = arith.constant 1 : index
    %c128_204 = arith.constant 128 : index
    %242 = vector.load %arg8[%c1_203, %c128_204] : memref<8x512xf32, #tpu.memory_space<vmem>>, vector<1x256xf32>
    tpu.vector_store %arg8[%c1_203, %c128_204], %211 {strides = array<i32>} : memref<8x512xf32, #tpu.memory_space<vmem>>, vector<1x256xf32>,
    %c2_205 = arith.constant 2 : index
    %c128_206 = arith.constant 128 : index
    %243 = vector.load %arg8[%c2_205, %c128_206] : memref<8x512xf32, #tpu.memory_space<vmem>>, vector<1x256xf32>
    tpu.vector_store %arg8[%c2_205, %c128_206], %240 {strides = array<i32>} : memref<8x512xf32, #tpu.memory_space<vmem>>, vector<1x256xf32>,
    %c0_207 = arith.constant 0 : index
    %c0_208 = arith.constant 0 : index
    %244 = vector.load %arg6[%c0_207, %c0_208] : memref<1x256xf32, #tpu.memory_space<vmem>>, vector<1x256xf32>
    tpu.vector_store %arg6[%c0_207, %c0_208], %237 {strides = array<i32>} : memref<1x256xf32, #tpu.memory_space<vmem>>, vector<1x256xf32>,
    %c0_209 = arith.constant 0 : index
    %c111_210 = arith.constant 111 : index
    %245 = vector.load %arg8[%c0_209, %c111_210] : memref<8x512xf32, #tpu.memory_space<vmem>>, vector<8x256xf32>
    %cst_211 = arith.constant 0.000000e+00 : f32
    %246 = vector.shape_cast %4 : vector<1x256xi1> to vector<1x256xi1>
    %247 = vector.broadcast %246 : vector<1x256xi1> to vector<8x256xi1>
    %248 = vector.broadcast %cst_211 : f32 to vector<8x256xf32>
    %249 = arith.select %247, %245, %248 : vector<8x256xi1>, vector<8x256xf32>
    %c0_212 = arith.constant 0 : index
    %c112_213 = arith.constant 112 : index
    %250 = vector.load %arg8[%c0_212, %c112_213] : memref<8x512xf32, #tpu.memory_space<vmem>>, vector<8x256xf32>
    %c0_214 = arith.constant 0 : index
    %c113_215 = arith.constant 113 : index
    %251 = vector.load %arg8[%c0_214, %c113_215] : memref<8x512xf32, #tpu.memory_space<vmem>>, vector<8x256xf32>
    %cst_216 = arith.constant 0.000000e+00 : f32
    %252 = vector.shape_cast %6 : vector<1x256xi1> to vector<1x256xi1>
    %253 = vector.broadcast %252 : vector<1x256xi1> to vector<8x256xi1>
    %254 = vector.broadcast %cst_216 : f32 to vector<8x256xf32>
    %255 = arith.select %253, %251, %254 : vector<8x256xi1>, vector<8x256xf32>
    %c0_217 = arith.constant 0 : index
    %c127_218 = arith.constant 127 : index
    %256 = vector.load %arg8[%c0_217, %c127_218] : memref<8x512xf32, #tpu.memory_space<vmem>>, vector<8x256xf32>
    %cst_219 = arith.constant 0.000000e+00 : f32
    %257 = vector.shape_cast %4 : vector<1x256xi1> to vector<1x256xi1>
    %258 = vector.broadcast %257 : vector<1x256xi1> to vector<8x256xi1>
    %259 = vector.broadcast %cst_219 : f32 to vector<8x256xf32>
    %260 = arith.select %258, %256, %259 : vector<8x256xi1>, vector<8x256xf32>
    %c0_220 = arith.constant 0 : index
    %c128_221 = arith.constant 128 : index
    %261 = vector.load %arg8[%c0_220, %c128_221] : memref<8x512xf32, #tpu.memory_space<vmem>>, vector<8x256xf32>
    %c0_222 = arith.constant 0 : index
    %c129_223 = arith.constant 129 : index
    %262 = vector.load %arg8[%c0_222, %c129_223] : memref<8x512xf32, #tpu.memory_space<vmem>>, vector<8x256xf32>
    %cst_224 = arith.constant 0.000000e+00 : f32
    %263 = vector.shape_cast %6 : vector<1x256xi1> to vector<1x256xi1>
    %264 = vector.broadcast %263 : vector<1x256xi1> to vector<8x256xi1>
    %265 = vector.broadcast %cst_224 : f32 to vector<8x256xf32>
    %266 = arith.select %264, %262, %265 : vector<8x256xi1>, vector<8x256xf32>
    %c0_225 = arith.constant 0 : index
    %c143_226 = arith.constant 143 : index
    %267 = vector.load %arg8[%c0_225, %c143_226] : memref<8x512xf32, #tpu.memory_space<vmem>>, vector<8x256xf32>
    %cst_227 = arith.constant 0.000000e+00 : f32
    %268 = vector.shape_cast %4 : vector<1x256xi1> to vector<1x256xi1>
    %269 = vector.broadcast %268 : vector<1x256xi1> to vector<8x256xi1>
    %270 = vector.broadcast %cst_227 : f32 to vector<8x256xf32>
    %271 = arith.select %269, %267, %270 : vector<8x256xi1>, vector<8x256xf32>
    %c0_228 = arith.constant 0 : index
    %c144_229 = arith.constant 144 : index
    %272 = vector.load %arg8[%c0_228, %c144_229] : memref<8x512xf32, #tpu.memory_space<vmem>>, vector<8x256xf32>
    %c0_230 = arith.constant 0 : index
    %c145_231 = arith.constant 145 : index
    %273 = vector.load %arg8[%c0_230, %c145_231] : memref<8x512xf32, #tpu.memory_space<vmem>>, vector<8x256xf32>
    %cst_232 = arith.constant 0.000000e+00 : f32
    %274 = vector.shape_cast %6 : vector<1x256xi1> to vector<1x256xi1>
    %275 = vector.broadcast %274 : vector<1x256xi1> to vector<8x256xi1>
    %276 = vector.broadcast %cst_232 : f32 to vector<8x256xf32>
    %277 = arith.select %275, %273, %276 : vector<8x256xi1>, vector<8x256xf32>
    %278 = tpu.concatenate %249, %250, %255, %260, %261, %266, %271, %272, %277 in 0 : vector<8x256xf32>, vector<8x256xf32>, vector<8x256xf32>, vector<8x256xf32>, vector<8x256xf32>, vector<8x256xf32>, vector<8x256xf32>, vector<8x256xf32>, vector<8x256xf32> -> vector<72x256xf32>
    %c0_233 = arith.constant 0 : index
    %c0_234 = arith.constant 0 : index
    %279 = vector.load %arg2[%c0_233, %c0_234] : memref<32x72xf32, #tpu.memory_space<vmem>>, vector<32x72xf32>
    %cst_235 = arith.constant dense<0.000000e+00> : vector<32x256xf32>
    %280 = tpu.matmul %279, %278, %cst_235 {dimension_numbers = #tpu.dot_dimension_numbers<[1], [0], [0], [1], [0, 0, 1, 1], [], []>} : vector<32x72xf32>, vector<72x256xf32>, vector<32x256xf32> -> vector<32x256xf32>
    %cst_236 = arith.constant 0.000000e+00 : f32
    %281 = vector.broadcast %cst_236 : f32 to vector<32x256xf32>
    %282 = arith.maximumf %280, %281 : vector<32x256xf32>
    %c0_237 = arith.constant 0 : index
    %c0_238 = arith.constant 0 : index
    %283 = vector.load %arg3[%c0_237, %c0_238] : memref<1x32xf32, #tpu.memory_space<vmem>>, vector<1x32xf32>
    %cst_239 = arith.constant dense<0.000000e+00> : vector<1x256xf32>
    %284 = tpu.matmul %283, %282, %cst_239 {dimension_numbers = #tpu.dot_dimension_numbers<[1], [0], [0], [1], [0, 0, 1, 1], [], []>} : vector<1x32xf32>, vector<32x256xf32>, vector<1x256xf32> -> vector<1x256xf32>
    %c0_240 = arith.constant 0 : index
    %c0_241 = arith.constant 0 : index
    %285 = vector.load %arg4[%c0_240, %c0_241] : memref<1x1xf32, #tpu.memory_space<vmem>>, vector<1x1xf32>
    %286 = vector.broadcast %285 : vector<1x1xf32> to vector<1x256xf32>
    %287 = arith.addf %284, %286 : vector<1x256xf32>
    %c0_242 = arith.constant 0 : index
    %c128_243 = arith.constant 128 : index
    %288 = vector.load %arg8[%c0_242, %c128_243] : memref<8x512xf32, #tpu.memory_space<vmem>>, vector<1x256xf32>
    %cst_244 = arith.constant 1.000000e+00 : f32
    %289 = vector.broadcast %cst_244 : f32 to vector<1x256xf32>
    %290 = arith.cmpf oeq, %288, %289 : vector<1x256xf32>
    %291 = arith.negf %287 : vector<1x256xf32>
    %292 = math.exp %291 : vector<1x256xf32>
    %cst_245 = arith.constant 1.000000e+00 : f32
    %293 = vector.broadcast %cst_245 : f32 to vector<1x256xf32>
    %294 = arith.addf %293, %292 : vector<1x256xf32>
    %295 = arith.divf %293, %294 : vector<1x256xf32>
    %cst_246 = arith.constant 0.000000e+00 : f32
    %296 = vector.broadcast %cst_246 : f32 to vector<1x256xf32>
    %297 = arith.select %290, %295, %296 : vector<1x256xi1>, vector<1x256xf32>
    %c0_247 = arith.constant 0 : index
    %c0_248 = arith.constant 0 : index
    %c0_249 = arith.constant 0 : index
    %298 = vector.load %arg5[%c0_247, %c0_248, %c0_249] : memref<1x1x256xf32, #tpu.memory_space<vmem>>, vector<1x1x256xf32>
    %299 = vector.shape_cast %298 : vector<1x1x256xf32> to vector<1x256xf32>
    %300 = arith.subf %299, %297 : vector<1x256xf32>
    %c0_250 = arith.constant 0 : index
    %c0_251 = arith.constant 0 : index
    %c0_252 = arith.constant 0 : index
    %301 = vector.load %arg5[%c0_250, %c0_251, %c0_252] : memref<1x1x256xf32, #tpu.memory_space<vmem>>, vector<1x1x256xf32>
    %302 = vector.shape_cast %301 : vector<1x1x256xf32> to vector<1x256xf32>
    %303 = vector.shape_cast %300 : vector<1x256xf32> to vector<1x1x256xf32>
    tpu.vector_store %arg5[%c0_250, %c0_251, %c0_252], %303 {strides = array<i32>} : memref<1x1x256xf32, #tpu.memory_space<vmem>>, vector<1x1x256xf32>,
    return
  }
  func.func @transform_0(%arg0: i32) -> (i32, i32, i32) {
    %c0_i32 = arith.constant 0 : i32
    %c0_i32_0 = arith.constant 0 : i32
    %c0_i32_1 = arith.constant 0 : i32
    return %arg0, %c0_i32, %c0_i32_0 : i32, i32, i32
  }
  func.func @transform_1(%arg0: i32) -> (i32, i32) {
    %c0_i32 = arith.constant 0 : i32
    %c0_i32_0 = arith.constant 0 : i32
    %c0_i32_1 = arith.constant 0 : i32
    return %c0_i32, %c0_i32_0 : i32, i32
  }
  func.func @transform_2(%arg0: i32) -> (i32, i32) {
    %c0_i32 = arith.constant 0 : i32
    %c0_i32_0 = arith.constant 0 : i32
    %c0_i32_1 = arith.constant 0 : i32
    return %c0_i32, %c0_i32_0 : i32, i32
  }
  func.func @transform_3(%arg0: i32) -> (i32, i32) {
    %c0_i32 = arith.constant 0 : i32
    %c0_i32_0 = arith.constant 0 : i32
    %c0_i32_1 = arith.constant 0 : i32
    return %c0_i32, %c0_i32_0 : i32, i32
  }
  func.func @transform_4(%arg0: i32) -> (i32, i32, i32) {
    %c0_i32 = arith.constant 0 : i32
    %c0_i32_0 = arith.constant 0 : i32
    %c0_i32_1 = arith.constant 0 : i32
    return %arg0, %c0_i32, %c0_i32_0 : i32, i32, i32
  }
}

</mosaic_0001>

<bundles_post_ra>
// kernel: tpu_custom_call.1
= control target key start
LH: loop header
LB: loop body
LE: loop exit
PB: predicated region body
PF: predicated region fallthrough
CT: control target
= control target key end

     0   :  { %s3423_s0 = inlined_call_operand.hbm [shape: f32[2,1,256], index: 0, kind: input, shape index: {}]   ;;  %s3424_s1 = inlined_call_operand.hbm [shape: f32[32,72], index: 1, kind: input, shape index: {}]   ;;  %s3425_s2 = inlined_call_operand.vmem [shape: f32[1,32], index: 2, kind: input, shape index: {}]   ;;  %s3426_s3 = inlined_call_operand.<no memory space> [shape: f32[1,1], index: 3, kind: input, shape index: {}]   ;;  %s3427_s4 = inlined_call_operand.hbm [shape: f32[2,1,256], index: 4, kind: output, shape index: {}]  }
   0x1   :  { %v9_v0 = vstv %s3426_s3 }
   0x2   :  { %10 = vst [vmem:[#allocation5] sm:$0x1] %v9_v0 }
   0x3   :  { %11 = vsyncpa [#allocation7], 0 }
   0x4   :  { %13 = vsyncpa [#allocation7 + $0x1], 0 }
   0x5   :  { %14 = vsyncpa [#allocation10], 0 }
   0x6   :  { %15 = vsyncpa [#allocation8], 0 }
   0x7   :  { %17 = vsyncpa [#allocation8 + $0x1], 0  ;;  %s2538_s17 = smov 0   ;;  %s2540_s18 = smov 0  }
   0x8   :  { %s2542_s19 = smov 0   ;;  %s2544_s20 = smov 0  }
   0x9 LB: > { %s2559_s3 = sadd.s32 4294967295, %s2488_s20   ;;  %s1983_s21 = sadd.s32 4294967294, %s2488_s20   ;;  %s2488_s20 = sphi %s2544_s20, %s3530_s20   ;;  %s2484_s19 = sphi %s2542_s19, %s3529_s19   ;;  %s2480_s18 = sphi %s2540_s18, %s3528_s18   ;;  %s2476_s17 = sphi %s2538_s17, %s3527_s17  }
   0xa   : > { %p43_p0 = scmp.ne.s32.totalorder %s2480_s18, %s2476_s17  ;;  %p3428_p1 = scmp.eq.s32.totalorder %s2559_s3, 0 }
   0xb   : > { %p136_p3 = scmp.eq.s32.totalorder %s1983_s21, 1  ;;  %p1984_p5 = scmp.ge.s32.totalorder %s2488_s20, 1 }
   0xc   : > { %p2568_p4 = por %p3428_p1, %p43_p0  ;;  %p143_p7 = scmp.lt.s32.totalorder %s2488_s20, 3 }
   0xd   : > { %p2573_p6 = por %p136_p3, %p43_p0  ;;  %s2490_s25 = smov [#allocation9]  }
   0xe   : > { %s3441_s22 = scalar_select %p2568_p4, 1, 0 }
   0xf   : > { %s3442_s23 = scalar_select %p2573_p6, 1, 0 }
  0x10   : > { %p2578_p8 = pnand %p1984_p5, %p143_p7  ;;  %s155_s26 = sshll.u32 %s2490_s25, 4  ;;  %s2582_s26 = int_to_ptr.vmem [resolvable:$true] %s155_s26 }
  0x11   : > { %s2594_s28 = sadd.s32 1, %s2488_s20   ;;  %s30_s29 = sadd.s32 1, %s2484_s19 }
  0x12   : > { %s3443_s24 = scalar_select %p2578_p8, 1, 0 }
  0x13   : > { %p2162_p9 = pneg %p2578_p8  ;;  %s27_s30 = ssub.s32 %s2488_s20, %s2594_s28 }
  0x14   : > { %s2360_s7 = scalar_lea.hbm %s3424_s1, 512 }
  0x15   : > { %p2589_p11 = pnand %p2162_p9, %p3428_p1  ;;  %p2361_p12 = scmp.ne.s32.totalorder %s3424_s1, %s2360_s7 }
  0x16   : > { %p2367_p5 = scmp.lt.u32.totalorder %s2360_s7, %s3424_s1 }
  0x17   : > { %p2362_p13 = pneg %p2589_p11 }
  0x19   : > { %p2363_p0 = pnand %p2362_p13, %p2361_p12 }
  0x1b   : > { %p2364_p3 = pneg %p2363_p0 }
  0x1d   : > { %p2369_p7 = pnand %p2367_p5, %p2364_p3 }
  0x1f   : > { %2372 = shalt.err (!%p2369_p7)
}
  0x20   : > { %s2373_s12 = scalar_lea.vmem %s2582_s26, 512  ;;  %p2381_p2 = scmp.lt.s32.totalorder %s2582_s26, %s2582_s26 }
  0x21   : > { %p2374_p9 = scmp.ne.s32.totalorder %s2582_s26, %s2373_s12  ;;  %p2382_p6 = scmp.lt.s32.totalorder %s2373_s12, %s2373_s12 }
  0x23   : > { %p2376_p10 = pnand %p2374_p9, %p2362_p13  ;;  %p2383_p4 = por %p2382_p6, %p2381_p2 }
  0x25   : > { %p2377_p1 = pneg %p2376_p10 }
  0x27   : > { %p2384_p8 = pnand %p2383_p4, %p2377_p1 }
  0x29   : > { %2387 = shalt.err (!%p2384_p8)
}
  0x2a   : > { %s2491_s13 = smov 128   ;;  %s2492_s14 = smov 8  }
  0x2b   : > { %2165 = dma.hbm_to_vmem [thread:$0]  (!%p2589_p11), %s3424_s1, 512, %s2582_s26, [#allocation10], %s2491_s13, %s2491_s13, %s2492_s14  }
  0x2c   : > { %p28_p2 = scmp.eq.s32.totalorder %s27_s30, 0  ;;  %p37_p1 = scmp.ne.s32.totalorder %s2484_s19, %s2480_s18 }
  0x2d   : > { %p38_p4 = scmp.eq.s32.totalorder %s2488_s20, 0  ;;  %p2175_p6 = scmp.lt.s32.totalorder %s2488_s20, 2 }
  0x2e   : > { %s2625_s21 = scalar_select %p28_p2, %s2484_s19, %s30_s29  }
  0x2f   : > { %p39_p8 = por %p38_p4, %p37_p1  ;;  %p3445_p10 = scmp.eq.s32.totalorder %s2559_s3, 1 }
  0x30   : > { %s175_s5 = sand.u32 1, %s2484_s19   ;;  %s2056_s6 = sshll.u32 %s2488_s20, 5 }
  0x31   : > { %p2629_p12 = por %p3445_p10, %p37_p1  ;;  %s1987_s7 = sshll.u32 %s175_s5, 1 }
  0x32   : > { %s2638_s9 = scalar_lea.hbm %s3423_s0, %s2056_s6  ;;  %s179_s26 = scalar_lea.vmem [#allocation6], %s1987_s7 }
  0x33   : > { %s187_s29 = sshll.u32 %s179_s26, 4  ;;  %p2640_p11 = pnand %p2175_p6, %p39_p8  ;;  %s2644_s29 = int_to_ptr.vmem [resolvable:$true] %s187_s29 }
  0x34   : > { %s176_s10 = scalar_lea.sflag [#allocation7], %s175_s5  ;;  %s2388_s11 = scalar_lea.hbm %s2638_s9, 32 }
  0x35   : > { %p2389_p13 = scmp.ne.s32.totalorder %s2638_s9, %s2388_s11  ;;  %p2390_p0 = pneg %p2640_p11 }
  0x36   : > { %s2393_s14 = scalar_lea.hbm %s3423_s0, 64  ;;  %p2394_p7 = scmp.lt.u32.totalorder %s2638_s9, %s3423_s0 }
  0x37   : > { %p2391_p3 = pnand %p2390_p0, %p2389_p13  ;;  %p2395_p9 = scmp.lt.u32.totalorder %s2393_s14, %s2388_s11 }
  0x38   : > { %p2397_p1 = scmp.lt.u32.totalorder %s2388_s11, %s2638_s9 }
  0x39   : > { %p2392_p5 = pneg %p2391_p3  ;;  %p2396_p2 = por %p2395_p9, %p2394_p7 }
  0x3b   : > { %p2398_p4 = por %p2397_p1, %p2396_p2 }
  0x3d   : > { %p2399_p6 = pnand %p2398_p4, %p2392_p5 }
  0x3f   : > { %2402 = shalt.err (!%p2399_p6)
}
  0x40   : > { %s2403_s5 = scalar_lea.vmem %s2644_s29, 32  ;;  %s2493_s6 = smov [#allocation6]  }
  0x41   : > { %p2404_p8 = scmp.ne.s32.totalorder %s2644_s29, %s2403_s5  ;;  %s2408_s7 = sshll.u32 %s2493_s6, 4  ;;  %s2409_s7 = int_to_ptr.vmem [resolvable:$false] %s2408_s7 }
  0x42   : > { %s2410_s27 = scalar_lea.vmem %s2409_s7, 64  ;;  %p2411_p3 = scmp.lt.s32.totalorder %s2644_s29, %s2409_s7 }
  0x43   : > { %p2406_p10 = pnand %p2404_p8, %p2390_p0  ;;  %p2412_p7 = scmp.lt.s32.totalorder %s2410_s27, %s2403_s5 }
  0x45   : > { %p2407_p13 = pneg %p2406_p10  ;;  %p2413_p9 = por %p2412_p7, %p2411_p3 }
  0x47   : > { %p2414_p2 = pnand %p2413_p9, %p2407_p13 }
  0x49   : > { %2417 = shalt.err (!%p2414_p2)
}
  0x4a   : > { %2169 = dma.hbm_to_vmem [thread:$0]  (!%p2640_p11), %s2638_s9, 32, %s2644_s29, %s176_s10  }
  0x4b   : > { %p3448_p5 = scmp.ne.s32.totalorder %s3443_s24, 0 }
  0x4c   : > { %s2674_s8 = sand.u32 (!%p3448_p5), 1, %s2480_s18   ;;  %p3449_p0 = scmp.ne.s32.totalorder (!%p3448_p5), %s3441_s22, 0 }
  0x4d   : > { %196 = sbr.rel (%p3448_p5) target bundleno = 3108 (0xc24), region = 36  ;;  %s1991_s26 = sshll.u32 (!%p3448_p5), %s2674_s8, 1 }
  0x4e   : > { %s199_s11 = scalar_lea.sflag (!%p3448_p5), [#allocation7], %s2674_s8  ;;  %s202_s12 = scalar_lea.vmem (!%p3448_p5), [#allocation6], %s1991_s26 }
  0x54   : > { %2463 = dma.done.wait (%p3449_p0), %s199_s11, 32  }
  0x55   : > { %2465 = vsyncadd (%p3449_p0), %s199_s11, 4294967264  ;;  %p3450_p11 = scmp.eq.s32.totalorder %s2559_s3, 0 }
  0x57   : > { %2467 = dma.done.wait (%p3450_p11), [#allocation10], 512   ;;  %p3451_p1 = pmov %p3450_p11 }
  0x58   : > { %v231_v1 = vlaneseq  ;;  %v2494_v2 = vmov inf   ;;  %v2692_v4 = vld [vmem:[%s202_s12] sm:$0x3]  ;;  %s2495_s22 = smov 1   ;;  %s2496_s24 = smov 127   ;;  %vm281_vm2 = vcmask 7168  }
  0x59   : > { %2469 = vsyncadd (%p3451_p1), [#allocation10], 4294966784  ;;  %s2497_s9 = smov 96   ;;  %s2498_s29 = smov 112   ;;  %v2499_v22 = vmov 1966171168  }
  0x5a   : > { %vm247_vm0 = vcmp.lt.s32.totalorder %v231_v1, 128  ;;  %vm2688_vm1 = vcmp.lt.s32.totalorder %v231_v1, 256  ;;  %v264_v6 = vshrl.u32 %v231_v1, 7  ;;  %v232_v18 = vand.u32 127, %v231_v1  ;;  %s2500_s30 = smov 16   ;;  %s2805_s10 = scalar_lea.vmem [#allocation11], %s1991_s26 }
  0x5b   : > { %249 = vst.msk [vmem:[#allocation3] sm:$0x1] %vm247_vm0, %v2494_v2  ;;  %250 = vst.msk [vmem:[#allocation3 + $0x3] sm:$0x1] %vm247_vm0, %v2494_v2  ;;  %v327_v23 = vunpack.c.l.s4 %v2499_v22  ;;  %vm3440_vm5 = vcmask 1039360   ;;  %vm3434_vm8 = vcmask 785408  }
  0x5c   : > { %246 = vst.msk [vmem:[#allocation2] sm:$0x3] %vm2688_vm1, %v2692_v4  ;;  %v2705_v7 = vsub.s32 0, %v264_v6  ;;  %v2707_v8 = vsub.s32 2, %v264_v6  ;;  %v2709_v9 = vsub.s32 1, %v264_v6  ;;  %v233_v19 = vadd.s32 128, %v232_v18 }
  0x5d   : > { %v234_v24 = vand.u32 15, %v232_v18  ;;  %v328_v28 = vunpack.c.0.s8 %v327_v23  ;;  %vm3439_vm9 = vcmask 916480   ;;  %vm3433_vm10 = vcmask 130048   ;;  %245 = vst.msk [vmem:[%s2805_s10] sm:$0x3] %vm2688_vm1, %v2692_v4  ;;  %s2503_s13 = smov 17  }
  0x5e   : > { %v235_v25 = vand.u32 15, %v233_v19  ;;  %s2504_s14 = smov 15   ;;  %s2505_s15 = smov 113   ;;  %vm3432_vm11 = vcmask 138240   ;;  %vm2507_vm12 = vmmov 1   ;;  %vm3431_vm14 = vcmask 121856  }
  0x5f   : > { %vm2731_vm3 = vcmp.ge.s32.totalorder %v234_v24, 1  ;;  %vm2739_vm6 = vcmp.le.s32.totalorder %v234_v24, 14  ;;  %v2759_v43 = vsub.s32 %v328_v28, %v264_v6  ;;  %s2506_s16 = smov 111   ;;  %v1768_v32 = vld [vmem:[#allocation5] sm:$0x1]  ;;  %s2057_s12 = sshll.u32 %s2559_s3, 5 }
  0x60   : > { %vm2735_vm4 = vcmp.ge.s32.totalorder %v235_v25, 1  ;;  %vm2743_vm7 = vcmp.le.s32.totalorder %v235_v25, 14  ;;  %vm2908_vm15 = vmpackc.low %vm2507_vm12, %vm2731_vm3 }
  0x61   : > { %vm2899_vm13 = vmpackc.low %vm2507_vm12, %vm2735_vm4 }
  0x62   : > { %vm2924_vm0 = vmpackc.low %vm2735_vm4, %vm2743_vm7 }
  0x63   : > { %v2697_v5 = vld [vmem:[#allocation2] sm:$0x3] }
  0x64   : > { %259 = vst.msk [vmem:[#allocation3 + $0x1] sm:$0x3] %vm2688_vm1, %v2697_v5  ;;  %458 = vst.msk [vmem:[#allocation4 + $0x9] ss:$8 sm:$0x3] %vm2688_vm1, %v2697_v5 }
  0x6b   : > { %v2711_v10 = vld [vmem:[#allocation3] sm:$0x7] }
  0x6c   : > { %v261_v11 = vld [vmem:[#allocation3 + $0x1] sm:$0x7]  ;;  %v274_v12 = vrot.slane %v2711_v10, %v2707_v8  ;;  %v266_v13 = vrot.slane %v2711_v10, %v2705_v7  ;;  %v270_v15 = vrot.slane %v2711_v10, %v2709_v9 }
  0x6d   : > { %v292_v14 = vrot.slane %v261_v11, %v2705_v7  ;;  %v300_v16 = vrot.slane %v261_v11, %v2707_v8  ;;  %v296_v17 = vrot.slane %v261_v11, %v2709_v9 }
  0x6e   : > { %279 = vrot.lane.b32.xlu1 %v274_v12, %s2495_s22  ;;  %275 = vrot.lane.b32.xlu0 %v266_v13, %s2495_s22 }
  0x72   : > { %301 = vrot.lane.b32.xlu1 %v292_v14, %s2496_s24  ;;  %277 = vrot.lane.b32.xlu0 %v270_v15, %s2495_s22 }
  0x76   : > { %305 = vrot.lane.b32.xlu1 %v300_v16, %s2496_s24  ;;  %303 = vrot.lane.b32.xlu0 %v296_v17, %s2496_s24 }
  0x7a   : > { %314 = vrot.lane.b32.xlu0 %v261_v11, %s2497_s9 }
  0x7e   : > { %348 = vrot.lane.b32.xlu0 %v2697_v5, %s2498_s29 }
  0xe0   : > { %v280_v20 = vpop.permute.xlu1 %279  ;;  %v276_v21 = vpop.permute.xlu0 %275 }
  0xe4   : > { %v302_v26 = vpop.permute.xlu1 %301  ;;  %v278_v27 = vpop.permute.xlu0 %277 }
  0xe5   : > { %v282_v33 = vsel %vm281_vm2, %v276_v21, %v278_v27  ;;  %v283_v34 = vsel %vm281_vm2, %v278_v27, %v280_v20 }
  0xe6   : > { %v286_v39 = vsel %vm2731_vm3, %v282_v33, inf  ;;  %v287_v40 = vsel %vm2735_vm4, %v283_v34, inf }
  0xe8   : > { %v306_v35 = vpop.permute.xlu1 %305  ;;  %v304_v36 = vpop.permute.xlu0 %303 }
  0xe9   : > { %v308_v37 = vsel %vm3440_vm5, %v302_v26, %v304_v36  ;;  %v309_v38 = vsel %vm3440_vm5, %v304_v36, %v306_v35 }
  0xea   : > { %v312_v41 = vsel %vm2739_vm6, %v308_v37, inf  ;;  %v313_v42 = vsel %vm2743_vm7, %v309_v38, inf }
  0xeb   : > { %v321_v44 = vmin.f32 %v286_v39, %v312_v41  ;;  %v322_v45 = vmin.f32 %v287_v40, %v313_v42  ;;  %v453_v41 = vld [vmem:[%s2805_s10] sm:$0x3] }
  0xec   : > { %v315_v49 = vpop.permute.xlu0 %314  ;;  %461 = vst.msk [vmem:[#allocation4 + $0xa] ss:$8 sm:$0x3] %vm2688_vm1, %v453_v41 }
  0xed   : > { %v325_v46 = vcombine.low %v321_v44, %v322_v45  ;;  %v316_v50 = vrot.slane %v315_v49, 7  ;;  %v2501_v44 = vmov 0.0   ;;  %v2502_v45 = vmov 1.0  }
  0xee   : > { %251 = vst [vmem:[#allocation4] sm:$0xff] %v2501_v44  ;;  %256 = vst [vmem:[#allocation4 + $0x8] sm:$0xf0] %v2501_v44  ;;  %661 = vmatprep.mubr.f32.mxu0 %v2501_v44  ;;  %1198 = vmatprep.mubr.f32.mxu1 %v2501_v44 }
  0xef   : > { %v332_v47 = vrot.slane %v325_v46, %v2759_v43  ;;  %v318_v52 = vsel %vm3434_vm8, %v316_v50, %v315_v49  ;;  %257 = vst [vmem:[#allocation4 + $0x10] sm:$0xf0] %v2501_v44  ;;  %254 = vst.msk [vmem:[#allocation4 + $0xb] ss:$8 sm:$0x3] %vm2688_vm1, %v2502_v45 }
  0xf0   : > { %v349_v51 = vpop.permute.xlu0 %348  ;;  %v320_v56 = vmin.f32 %v2711_v10, %v318_v52 }
  0xf1   : > { %v339_v48 = vrot.slane %v332_v47, %v2759_v43  ;;  %v350_v55 = vrot.slane %v349_v51, 7 }
  0xf3   : > { %340 = vrot.lane.b32.xlu1 %v339_v48, %s2498_s29  ;;  %v351_v59 = vsel %vm3439_vm9, %v350_v55, %v349_v51 }
 0x165   : > { %v341_v53 = vpop.permute.xlu1 %340 }
 0x166   : > { %v342_v54 = vrot.slane %v341_v53, 7 }
 0x168   : > { %v344_v57 = vsel %vm3439_vm9, %v342_v54, %v341_v53 }
 0x169   : > { %v346_v58 = vmin.f32 %v320_v56, %v344_v57 }
 0x16b   : > { %v2768_v60 = vmin.f32 %v346_v58, %v351_v59 }
 0x16d   : > { %355 = vrot.lane.b32.xlu1 %v2768_v60, %s2500_s30 }
 0x1df   : > { %v356_v61 = vpop.permute.xlu1 %355 }
 0x1e0   : > { %v357_v62 = vrot.slane %v356_v61, 1 }
 0x1e2   : > { %v359_v63 = vsel %vm3433_vm10, %v356_v61, %v357_v62 }
 0x1e3   : > { %361 = vst.msk [vmem:[#allocation3 + $0x1] sm:$0x3] %vm2688_vm1, %v359_v63 }
 0x1ea   : > { %v362_v0 = vld [vmem:[#allocation3] sm:$0x7] }
 0x1eb   : > { %v372_v1 = vrot.slane %v362_v0, %v2709_v9  ;;  %v368_v2 = vrot.slane %v362_v0, %v2705_v7  ;;  %v363_v6 = vld [vmem:[#allocation3 + $0x1] sm:$0x7]  ;;  %v376_v11 = vrot.slane %v362_v0, %v2707_v8 }
 0x1ec   : > { %v393_v10 = vrot.slane %v363_v6, %v2705_v7  ;;  %v401_v12 = vrot.slane %v363_v6, %v2707_v8  ;;  %v397_v13 = vrot.slane %v363_v6, %v2709_v9 }
 0x1ed   : > { %379 = vrot.lane.b32.xlu1 %v372_v1, %s2495_s22  ;;  %377 = vrot.lane.b32.xlu0 %v368_v2, %s2495_s22 }
 0x1f1   : > { %402 = vrot.lane.b32.xlu1 %v393_v10, %s2496_s24  ;;  %381 = vrot.lane.b32.xlu0 %v376_v11, %s2495_s22 }
 0x1f5   : > { %406 = vrot.lane.b32.xlu1 %v401_v12, %s2496_s24  ;;  %404 = vrot.lane.b32.xlu0 %v397_v13, %s2496_s24 }
 0x1f9   : > { %414 = vrot.lane.b32.xlu0 %v363_v6, %s2497_s9 }
 0x25f   : > { %v380_v14 = vpop.permute.xlu1 %379  ;;  %v378_v15 = vpop.permute.xlu0 %377 }
 0x260   : > { %v383_v18 = vsel %vm281_vm2, %v378_v15, %v380_v14 }
 0x261   : > { %v387_v24 = vsel %vm2731_vm3, %v383_v18, inf }
 0x263   : > { %v403_v16 = vpop.permute.xlu1 %402  ;;  %v382_v17 = vpop.permute.xlu0 %381 }
 0x264   : > { %v384_v19 = vsel %vm281_vm2, %v380_v14, %v382_v17 }
 0x265   : > { %v388_v25 = vsel %vm2735_vm4, %v384_v19, inf  ;;  %v1655_v19 = vld [vmem:[#allocation9 + $0x8] sm:$0xff] }
 0x267   : > { %v407_v20 = vpop.permute.xlu1 %406  ;;  %v405_v21 = vpop.permute.xlu0 %404 }
 0x268   : > { %v408_v22 = vsel %vm3440_vm5, %v403_v16, %v405_v21  ;;  %v409_v23 = vsel %vm3440_vm5, %v405_v21, %v407_v20 }
 0x269   : > { %v412_v26 = vsel %vm2739_vm6, %v408_v22, inf  ;;  %v413_v27 = vsel %vm2743_vm7, %v409_v23, inf }
 0x26a   : > { %v420_v28 = vmin.f32 %v387_v24, %v412_v26  ;;  %v421_v33 = vmin.f32 %v388_v25, %v413_v27 }
 0x26b   : > { %v415_v37 = vpop.permute.xlu0 %414 }
 0x26c   : > { %v424_v34 = vcombine.low %v420_v28, %v421_v33  ;;  %v416_v38 = vrot.slane %v415_v37, 7 }
 0x26e   : > { %v431_v35 = vrot.slane %v424_v34, %v2759_v43  ;;  %v417_v39 = vsel %vm3434_vm8, %v416_v38, %v415_v37  ;;  %vm2954_vm8 = vmpackc.low %vm2739_vm6, %vm2507_vm12 }
 0x26f   : > { %v419_v4 = vmin.f32 %v362_v0, %v417_v39 }
 0x270   : > { %v438_v36 = vrot.slane %v431_v35, %v2759_v43 }
 0x272   : > { %439 = vrot.lane.b32.xlu1 %v438_v36, %s2498_s29 }
 0x276   : > { %474 = vrot.lane.b32.xlu1 %v2501_v44, %s2503_s13 }
 0x27a   : > { %491 = vrot.lane.b32.xlu1 %v2501_v44, %s2504_s14 }
 0x2e4   : > { %v440_v40 = vpop.permute.xlu1 %439 }
 0x2e5   : > { %v441_v42 = vrot.slane %v440_v40, 7 }
 0x2e7   : > { %v442_v46 = vsel %vm3439_vm9, %v441_v42, %v440_v40 }
 0x2e8   : > { %v444_v47 = vmin.f32 %v419_v4, %v442_v46  ;;  %v475_v1 = vpop.permute.xlu1 %474 }
 0x2ea   : > { %v445_v48 = vmin.f32 %v444_v47, %v2768_v60 }
 0x2ec   : > { %447 = vrot.lane.b32.xlu0 %v445_v48, %s2500_s30  ;;  %v492_v6 = vpop.permute.xlu1 %491 }
 0x2f0   : > { %560 = vrot.lane.b32.xlu0 %v2501_v44, %s2500_s30 }
 0x2f4   : > { %504 = vrot.lane.b32.xlu0 %v2501_v44, %s2495_s22 }
 0x35e   : > { %v448_v49 = vpop.permute.xlu0 %447 }
 0x35f   : > { %v449_v50 = vrot.slane %v448_v49, 1 }
 0x361   : > { %v450_v51 = vsel %vm3433_vm10, %v448_v49, %v449_v50 }
 0x362   : > { %v452_v52 = vsub.f32 %v2697_v5, %v450_v51  ;;  %463 = vst.msk [vmem:[#allocation2] sm:$0x3] %vm2688_vm1, %v450_v51  ;;  %v561_v2 = vpop.permute.xlu0 %560 }
 0x364   : > { %455 = vst.msk [vmem:[#allocation4 + $0x8] ss:$8 sm:$0x3] %vm2688_vm1, %v452_v52 }
 0x366   : > { %v505_v10 = vpop.permute.xlu0 %504 }
 0x369   : > { %v2839_v53 = vld [vmem:[#allocation2] sm:$0x3] }
 0x36a   : > { %817 = vst.msk [vmem:[#allocation3 + $0x1] sm:$0x3] %vm2688_vm1, %v2839_v53 }
 0x36b   : > { %v2844_v54 = vld [vmem:[#allocation4 + $0x8] sm:$0xff]  ;;  %v2846_v55 = vld [vmem:[#allocation4 + $0x10] sm:$0xff] }
 0x36c   : > { %v2233_v56 = vpack.i.bf16 %v2846_v55, %v2844_v54  ;;  %1009 = vst.msk [vmem:[#allocation4 + $0x9] ss:$8 sm:$0x3] %vm2688_vm1, %v2839_v53  ;;  %v2248_v5 = vpack.i.bf16 %v2501_v44, %v2846_v55 }
 0x36e   : > { %2234 = vrot.lane.b32.xlu0 %v2233_v56, %s2500_s30  ;;  %2229 = vrot.lane.b32.xlu1 %v2233_v56, %s2503_s13 }
 0x371   : > { %v2868_v57 = vld [vmem:[#allocation3] sm:$0x7] }
 0x372   : > { %2244 = vrot.lane.b32.xlu0 %v2233_v56, %s2495_s22  ;;  %2239 = vrot.lane.b32.xlu1 %v2233_v56, %s2504_s14  ;;  %v824_v58 = vrot.slane %v2868_v57, %v2705_v7  ;;  %v832_v59 = vrot.slane %v2868_v57, %v2707_v8  ;;  %v828_v60 = vrot.slane %v2868_v57, %v2709_v9  ;;  %v819_v61 = vld [vmem:[#allocation3 + $0x1] sm:$0x7] }
 0x373   : > { %v853_v62 = vrot.slane %v819_v61, %v2709_v9  ;;  %v849_v63 = vrot.slane %v819_v61, %v2705_v7  ;;  %v857_v0 = vrot.slane %v819_v61, %v2707_v8 }
 0x376   : > { %522 = vrot.lane.b32.xlu0 %v2844_v54, %s2496_s24  ;;  %2249 = vrot.lane.b32.xlu1 %v2248_v5, %s2496_s24 }
 0x37a   : > { %2259 = vrot.lane.b32.xlu0 %v2248_v5, %s2498_s29  ;;  %2254 = vrot.lane.b32.xlu1 %v2248_v5, %s2505_s15 }
 0x37e   : > { %570 = vrot.lane.b32.xlu0 %v2844_v54, %s2498_s29  ;;  %534 = vrot.lane.b32.xlu1 %v2844_v54, %s2505_s15 }
 0x382   : > { %551 = vrot.lane.b32.xlu0 %v2501_v44, %s2506_s16  ;;  %549 = vrot.lane.b32.xlu1 %v2846_v55, %s2506_s16 }
 0x386   : > { %833 = vrot.lane.b32.xlu0 %v824_v58, %s2495_s22  ;;  %547 = vrot.lane.b32.xlu1 %v2844_v54, %s2506_s16 }
 0x38a   : > { %837 = vrot.lane.b32.xlu0 %v832_v59, %s2495_s22  ;;  %835 = vrot.lane.b32.xlu1 %v828_v60, %s2495_s22 }
 0x38e   : > { %860 = vrot.lane.b32.xlu0 %v853_v62, %s2496_s24  ;;  %858 = vrot.lane.b32.xlu1 %v849_v63, %s2496_s24 }
 0x392   : > { %870 = vrot.lane.b32.xlu0 %v819_v61, %s2497_s9  ;;  %862 = vrot.lane.b32.xlu1 %v857_v0, %s2496_s24 }
 0x396   : > { %902 = vrot.lane.b32.xlu0 %v2839_v53, %s2498_s29 }
 0x3e0   : > { %v2235_v11 = vpop.permute.xlu0 %2234  ;;  %v2230_v12 = vpop.permute.xlu1 %2229 }
 0x3e1   : > { %v2237_v13 = vunpack.i.h.bf16 %v2235_v11  ;;  %v2236_v14 = vunpack.i.l.bf16 %v2235_v11  ;;  %v2232_v15 = vunpack.i.h.bf16 %v2230_v12  ;;  %v2231_v16 = vunpack.i.l.bf16 %v2230_v12 }
 0x3e3   : > { %v482_v17 = vsel %vm3432_vm11, %v2231_v16, %v2232_v15  ;;  %v567_v18 = vsel %vm3433_vm10, %v2236_v14, %v2237_v13  ;;  %v481_v20 = vsel %vm3432_vm11, %v475_v1, %v2231_v16  ;;  %v566_v21 = vsel %vm3433_vm10, %v561_v2, %v2236_v14  ;;  %vm2945_vm11 = vmpackc.low %vm2743_vm7, %vm2507_vm12  ;;  %v2973_v16 = vld [vmem:[#allocation9] sm:$0xff] }
 0x3e4   : > { %v2245_v22 = vpop.permute.xlu0 %2244  ;;  %v2240_v23 = vpop.permute.xlu1 %2239  ;;  %v2058_v24 = vpack.c.bf16 %v567_v18, %v482_v17  ;;  %v2061_v25 = vpack.c.bf16 %v566_v21, %v481_v20  ;;  %vm3435_vm10 = vcmask 924672   ;;  %vm3436_vm12 = vcmask 908288   ;;  %v2981_v21 = vld [vmem:[#allocation9 + $0x8] sm:$0xff] }
 0x3e5   : > { %v2247_v27 = vunpack.i.h.bf16 %v2245_v22  ;;  %v2246_v28 = vunpack.i.l.bf16 %v2245_v22  ;;  %v2242_v33 = vunpack.i.h.bf16 %v2240_v23  ;;  %v2241_v34 = vunpack.i.l.bf16 %v2240_v23 }
 0x3e6   : > { %2060 = vmatprep.subr.msk.bf16.mxu0 %vm2899_vm13, %v2058_v24  ;;  %v2986_v24 = vld [vmem:[#allocation9 + $0x10] sm:$0xff] }
 0x3e7   : > { %v510_v35 = vsel %vm281_vm2, %v505_v10, %v2246_v28  ;;  %v511_v36 = vsel %vm281_vm2, %v2246_v28, %v2247_v27  ;;  %v498_v37 = vsel %vm3431_vm14, %v492_v6, %v2241_v34  ;;  %v499_v38 = vsel %vm3431_vm14, %v2241_v34, %v2242_v33  ;;  %2063 = vmatpush1.bf16.msk.msra.mxu0 %vm2908_vm15, %v2061_v25  ;;  %vm2932_vm14 = vmpackc.low %vm2731_vm3, %vm2739_vm6 }
 0x3e8   : > { %v2064_v40 = vpack.c.bf16 %v511_v36, %v499_v38  ;;  %v2067_v41 = vpack.c.bf16 %v510_v35, %v498_v37  ;;  %v523_v42 = vpop.permute.xlu0 %522  ;;  %v2250_v45 = vpop.permute.xlu1 %2249  ;;  %v2996_v35 = vld [vmem:[#allocation9 + $0x18] sm:$0xff] }
 0x3e9   : > { %v2252_v46 = vunpack.i.h.bf16 %v2250_v45  ;;  %v2251_v47 = vunpack.i.l.bf16 %v2250_v45 }
 0x3ea   : > { %2066 = vmatprep.subr.msk.bf16.mxu0 %vm2924_vm0, %v2064_v40 }
 0x3eb   : > { %v528_v48 = vsel %vm3440_vm5, %v523_v42, %v2251_v47  ;;  %v529_v49 = vsel %vm3440_vm5, %v2251_v47, %v2252_v46  ;;  %2069 = vmatpush1.bf16.msk.msra.mxu0 %vm2932_vm14, %v2067_v41 }
 0x3ec   : > { %v2070_v51 = vpack.c.bf16 %v529_v49, %v2846_v55  ;;  %v2073_v52 = vpack.c.bf16 %v528_v48, %v2844_v54  ;;  %v2260_v56 = vpop.permute.xlu0 %2259  ;;  %v2255_v5 = vpop.permute.xlu1 %2254 }
 0x3ed   : > { %v2262_v59 = vunpack.i.h.bf16 %v2260_v56  ;;  %v2261_v60 = vunpack.i.l.bf16 %v2260_v56  ;;  %v2257_v61 = vunpack.i.h.bf16 %v2255_v5  ;;  %v2256_v62 = vunpack.i.l.bf16 %v2255_v5 }
 0x3ee   : > { %2072 = vmatprep.subr.msk.bf16.mxu0 %vm2945_vm11, %v2070_v51 }
 0x3ef   : > { %v577_v55 = vsel %vm3439_vm9, %v2261_v60, %v2262_v59  ;;  %v542_v54 = vsel %vm3435_vm10, %v2256_v62, %v2257_v61  ;;  %2075 = vmatpush1.bf16.msk.msra.mxu0 %vm2954_vm8, %v2073_v52 }
 0x3f0   : > { %v2076_v63 = vpack.c.bf16 %v577_v55, %v542_v54  ;;  %v571_v0 = vpop.permute.xlu0 %570  ;;  %v535_v1 = vpop.permute.xlu1 %534 }
 0x3f1   : > { %v576_v2 = vsel %vm3439_vm9, %v571_v0, %v2261_v60  ;;  %v541_v6 = vsel %vm3435_vm10, %v535_v1, %v2256_v62  ;;  %vm3437_vm10 = vcmask 588800  }
 0x3f2   : > { %v2079_v10 = vpack.c.bf16 %v576_v2, %v541_v6  ;;  %2078 = vmatprep.subr.msk.bf16.mxu0 %vm2899_vm13, %v2076_v63  ;;  %v2508_v63 = vmov 0  }
 0x3f3   : > { %2263 = vset.pattern.permute.xlu0 %v2508_v63  ;;  %2334 = vset.pattern.permute.xlu1 %v2508_v63 }
 0x3f4   : > { %v552_v11 = vpop.permute.xlu0 %551  ;;  %v550_v12 = vpop.permute.xlu1 %549  ;;  %2081 = vmatpush1.bf16.msk.msra.mxu0 %vm2908_vm15, %v2079_v10 }
 0x3f5   : > { %v555_v13 = vsel %vm3436_vm12, %v550_v12, %v552_v11 }
 0x3f6   : > { %2004 = vmatprep.subr.msk.mxu0 %vm2743_vm7, %v555_v13 }
 0x3f8   : > { %v834_v14 = vpop.permute.xlu0 %833  ;;  %v548_v15 = vpop.permute.xlu1 %547 }
 0x3f9   : > { %v554_v17 = vsel %vm3436_vm12, %v548_v15, %v550_v12  ;;  %vm3474_vm12 = vcmask 785408  }
 0x3fa   : > { %2005 = vmatpush1.msk.msra.mxu0 %vm2739_vm6, %v554_v17 }
 0x3fb   : > { %2006 = vmatmul.mubr.msk.f32.vlgmr.msra.gmra.mrb[0].mxu0 %vm3437_vm10, %v2973_v16 }
 0x3fc   : > { %v838_v18 = vpop.permute.xlu0 %837  ;;  %v836_v20 = vpop.permute.xlu1 %835  ;;  %667 = vmatprep.mubr.f32.mxu0 %v2501_v44 }
 0x3fd   : > { %v839_v27 = vsel %vm281_vm2, %v834_v14, %v836_v20  ;;  %v840_v28 = vsel %vm281_vm2, %v836_v20, %v838_v18 }
 0x3fe   : > { %v843_v37 = vsel %vm2731_vm3, %v839_v27, inf  ;;  %v844_v38 = vsel %vm2735_vm4, %v840_v28, inf }
 0x3ff   : > { %2007 = vmatmul.mubr.msk.f32.gmra.mrb[2].mxu0 %vm3437_vm10, %v2981_v21 }
 0x400   : > { %v861_v22 = vpop.permute.xlu0 %860  ;;  %v859_v23 = vpop.permute.xlu1 %858  ;;  %673 = vmatprep.mubr.f32.mxu0 %v2501_v44 }
 0x401   : > { %v864_v25 = vsel %vm3440_vm5, %v859_v23, %v861_v22 }
 0x402   : > { %v868_v33 = vsel %vm2739_vm6, %v864_v25, inf }
 0x403   : > { %2008 = vmatmul.mubr.msk.f32.gmra.mrb[4].mxu0 %vm3437_vm10, %v2986_v24  ;;  %v876_v41 = vmin.f32 %v843_v37, %v868_v33 }
 0x404   : > { %v863_v34 = vpop.permute.xlu1 %862  ;;  %679 = vmatprep.mubr.f32.mxu0 %v2501_v44  ;;  %v871_v48 = vpop.permute.xlu0 %870 }
 0x405   : > { %v865_v36 = vsel %vm3440_vm5, %v861_v22, %v863_v34  ;;  %v872_v49 = vrot.slane %v871_v48, 7  ;;  %v694_v34 = vld [vmem:[%s3425_s2] sm:$0x1] }
 0x406   : > { %v869_v40 = vsel %vm2743_vm7, %v865_v36, inf }
 0x407   : > { %v877_v42 = vmin.f32 %v844_v38, %v869_v40  ;;  %2009 = vmatmul.mubr.msk.f32.gmra.mrb[6].mxu0 %vm3437_vm10, %v2996_v35  ;;  %v873_v52 = vsel %vm3474_vm12, %v872_v49, %v871_v48  ;;  %vm3438_vm12 = vcmask 261120   ;;  %vm3475_vm10 = vcmask 130048  }
 0x408   : > { %773 = vmatprep.mubr.f32.mxu0 %v2501_v44  ;;  %v903_v51 = vpop.permute.xlu0 %902  ;;  %v875_v60 = vmin.f32 %v2868_v57, %v873_v52 }
 0x409   : > { %v880_v45 = vcombine.low %v876_v41, %v877_v42  ;;  %v904_v5 = vrot.slane %v903_v51, 7 }
 0x40b   : > { %v887_v46 = vrot.slane %v880_v45, %v2759_v43  ;;  %v905_v55 = vsel %vm3439_vm9, %v904_v5, %v903_v51  ;;  %v695_v51 = vld [vmem:[#allocation5] sm:$0x1] }
 0x40d   : > { %v894_v47 = vrot.slane %v887_v46, %v2759_v43 }
 0x40f   : > { %895 = vrot.lane.b32.xlu1 %v894_v47, %s2498_s29 }
 0x481   : > { %v896_v56 = vpop.permute.xlu1 %895 }
 0x482   : > { %v897_v59 = vrot.slane %v896_v56, 7 }
 0x484   : > { %v898_v61 = vsel %vm3439_vm9, %v897_v59, %v896_v56 }
 0x485   : > { %v900_v62 = vmin.f32 %v875_v60, %v898_v61 }
 0x487   : > { %v3015_v54 = vmin.f32 %v900_v62, %v905_v55 }
 0x489   : > { %909 = vrot.lane.b32.xlu1 %v3015_v54, %s2500_s30 }
 0x4ce   : > { %v663_v0 = vpop.f32.mrb[0].mxu0 }
 0x4cf   : > { %v665_v1 = vpop.f32.mrb[1].mxu0  ;;  %v686_v2 = vmax.f32 %v663_v0, 0.0 }
 0x4d0   : > { %v687_v6 = vmax.f32 %v665_v1, 0.0 }
 0x4d2   : > { %v669_v10 = vpop.f32.mrb[2].mxu0 }
 0x4d3   : > { %v688_v11 = vmax.f32 %v669_v10, 0.0  ;;  %v671_v57 = vpop.f32.mrb[3].mxu0 }
 0x4d4   : > { %v689_v12 = vmax.f32 %v671_v57, 0.0 }
 0x4d5   : > { %v2084_v13 = vpack.c.bf16 %v688_v11, %v686_v2 }
 0x4d6   : > { %v2082_v14 = vpack.c.bf16 %v689_v12, %v687_v6  ;;  %v675_v15 = vpop.f32.mrb[4].mxu0 }
 0x4d7   : > { %v677_v17 = vpop.f32.mrb[5].mxu0  ;;  %v690_v18 = vmax.f32 %v675_v15, 0.0 }
 0x4d8   : > { %2083 = vmatprep.subr.bf16.mxu0 %v2082_v14  ;;  %v691_v20 = vmax.f32 %v677_v17, 0.0 }
 0x4d9   : > { %2085 = vmatpush1.bf16.msra.mxu0 %v2084_v13 }
 0x4da   : > { %v681_v22 = vpop.f32.mrb[6].mxu0 }
 0x4db   : > { %v692_v23 = vmax.f32 %v681_v22, 0.0  ;;  %v683_v25 = vpop.f32.mrb[7].mxu0 }
 0x4dc   : > { %v693_v27 = vmax.f32 %v683_v25, 0.0 }
 0x4dd   : > { %v2088_v28 = vpack.c.bf16 %v692_v23, %v690_v18 }
 0x4de   : > { %v2086_v33 = vpack.c.bf16 %v693_v27, %v691_v20 }
 0x4e0   : > { %2087 = vmatprep.subr.bf16.mxu0 %v2086_v33 }
 0x4e1   : > { %2089 = vmatpush1.bf16.msra.mxu0 %v2088_v28 }
 0x4e4   : > { %2010 = vmatmul.mubr.msk.f32.vlgmr.msra.gmra.mrb[8].mxu0 %vm3438_vm12, %v694_v34  ;;  %vm3476_vm12 = vcmask 785408  }
 0x4e5   : > { %1309 = vmatprep.mubr.f32.mxu0 %v2501_v44 }
 0x4fb   : > { %v910_v36 = vpop.permute.xlu1 %909 }
 0x4fc   : > { %v911_v37 = vrot.slane %v910_v36, 1 }
 0x4fe   : > { %v912_v38 = vsel %vm3475_vm10, %v910_v36, %v911_v37 }
 0x4ff   : > { %914 = vst.msk [vmem:[#allocation3 + $0x1] sm:$0x3] %vm2688_vm1, %v912_v38 }
 0x506   : > { %v3027_v40 = vld [vmem:[#allocation3] sm:$0x7] }
 0x507   : > { %v925_v41 = vrot.slane %v3027_v40, %v2709_v9  ;;  %v921_v42 = vrot.slane %v3027_v40, %v2705_v7  ;;  %v916_v45 = vld [vmem:[#allocation3 + $0x1] sm:$0x7]  ;;  %v929_v47 = vrot.slane %v3027_v40, %v2707_v8 }
 0x508   : > { %v946_v46 = vrot.slane %v916_v45, %v2705_v7  ;;  %v954_v48 = vrot.slane %v916_v45, %v2707_v8  ;;  %v950_v49 = vrot.slane %v916_v45, %v2709_v9 }
 0x509   : > { %932 = vrot.lane.b32.xlu1 %v925_v41, %s2495_s22  ;;  %930 = vrot.lane.b32.xlu0 %v921_v42, %s2495_s22 }
 0x50d   : > { %955 = vrot.lane.b32.xlu1 %v946_v46, %s2496_s24  ;;  %934 = vrot.lane.b32.xlu0 %v929_v47, %s2495_s22 }
 0x511   : > { %959 = vrot.lane.b32.xlu1 %v954_v48, %s2496_s24  ;;  %957 = vrot.lane.b32.xlu0 %v950_v49, %s2496_s24  ;;  %v813_v48 = vld [vmem:[%s2805_s10] sm:$0x3] }
 0x515   : > { %967 = vrot.lane.b32.xlu0 %v916_v45, %s2497_s9  ;;  %v780_v45 = vld [vmem:[#allocation4 + $0x8] ss:$8 sm:$0x3] }
 0x516   : > { %vm781_vm10 = vcmp.eq.f32.partialorder %v780_v45, 1.0 }
 0x519   : > { %698 = vperm.xlu0 %2263, %v695_v51  }
 0x51d   : > { %1098 = vrot.lane.b32.xlu0 %v2501_v44, %s2500_s30 }
 0x521   : > { %1044 = vrot.lane.b32.xlu0 %v2501_v44, %s2495_s22 }
 0x57b   : > { %v933_v52 = vpop.permute.xlu1 %932  ;;  %v931_v56 = vpop.permute.xlu0 %930 }
 0x57c   : > { %v936_v60 = vsel %vm281_vm2, %v931_v56, %v933_v52 }
 0x57d   : > { %v940_v1 = vsel %vm2731_vm3, %v936_v60, inf }
 0x57f   : > { %v956_v5 = vpop.permute.xlu1 %955  ;;  %v935_v59 = vpop.permute.xlu0 %934 }
 0x580   : > { %v937_v61 = vsel %vm281_vm2, %v933_v52, %v935_v59 }
 0x581   : > { %v941_v2 = vsel %vm2735_vm4, %v937_v61, inf }
 0x583   : > { %v960_v62 = vpop.permute.xlu1 %959  ;;  %v958_v55 = vpop.permute.xlu0 %957 }
 0x584   : > { %v961_v63 = vsel %vm3440_vm5, %v956_v5, %v958_v55  ;;  %v962_v0 = vsel %vm3440_vm5, %v958_v55, %v960_v62 }
 0x585   : > { %v965_v6 = vsel %vm2739_vm6, %v961_v63, inf  ;;  %v966_v10 = vsel %vm2743_vm7, %v962_v0, inf }
 0x586   : > { %v973_v11 = vmin.f32 %v940_v1, %v965_v6  ;;  %v974_v57 = vmin.f32 %v941_v2, %v966_v10 }
 0x587   : > { %v968_v15 = vpop.permute.xlu0 %967 }
 0x588   : > { %v977_v12 = vcombine.low %v973_v11, %v974_v57  ;;  %v969_v56 = vrot.slane %v968_v15, 7 }
 0x58a   : > { %v984_v13 = vrot.slane %v977_v12, %v2759_v43  ;;  %v970_v5 = vsel %vm3476_vm12, %v969_v56, %v968_v15  ;;  %vm3477_vm12 = vcmask 130048  }
 0x58b   : > { %v972_v61 = vmin.f32 %v3027_v40, %v970_v5  ;;  %vm3480_vm5 = vmmov %vm3477_vm12 }
 0x58c   : > { %v991_v14 = vrot.slane %v984_v13, %v2759_v43 }
 0x58e   : > { %992 = vrot.lane.b32.xlu1 %v991_v14, %s2498_s29 }
 0x598   : > { %v699_v17 = vpop.permute.xlu0 %698 }
 0x599   : > { %v704_v18 = vrot.slane %v699_v17, %v2705_v7 }
 0x5b7   : > { %v775_v20 = vpop.f32.mrb[8].mxu0 }
 0x5b8   : > { %v776_v22 = vadd.f32 %v775_v20, %v704_v18  ;;  %v777_v23 = vpop.f32.mrb[9].mxu0 }
 0x5b9   : > { %v778_v25 = vadd.f32 %v777_v23, %v704_v18  ;;  %v1099_v23 = vpop.permute.xlu0 %1098 }
 0x5ba   : > { %v2011_v27 = vmul.f32 -1.442695, %v776_v22 }
 0x5bb   : > { %v2012_v28 = vmul.f32 -1.442695, %v778_v25 }
 0x5bc   : > { %2335 = vpow2.f32 %v2011_v27 }
 0x5bd   : > { %2337 = vpow2.f32 %v2012_v28  ;;  %v1045_v27 = vpop.permute.xlu0 %1044 }
 0x5c6   : > { %v2336_v33 = vpop.eup %2335 }
 0x5c7   : > { %v2338_v34 = vpop.eup %2337  ;;  %v788_v36 = vadd.f32 1.0, %v2336_v33 }
 0x5c8   : > { %v789_v37 = vadd.f32 1.0, %v2338_v34 }
 0x5c9   : > { %2339 = vrcp.f32 %v788_v36 }
 0x5ca   : > { %2341 = vrcp.f32 %v789_v37 }
 0x5d3   : > { %v2340_v38 = vpop.eup %2339 }
 0x5d4   : > { %v2342_v41 = vpop.eup %2341 }
 0x5d5   : > { %v796_v42 = vcombine.low %v2340_v38, %v2342_v41 }
 0x5d7   : > { %v803_v46 = vrot.slane %v796_v42, %v2759_v43 }
 0x5d9   : > { %v810_v47 = vrot.slane %v803_v46, %v2759_v43 }
 0x5db   : > { %v812_v49 = vsel %vm781_vm10, %v810_v47, 0.0  ;;  %vm3478_vm10 = vcmask 138240  }
 0x5dc   : > { %v814_v51 = vsub.f32 %v813_v48, %v812_v49 }
 0x5de   : > { %815 = vst.msk [vmem:[%s2805_s10] sm:$0x3] %vm2688_vm1, %v814_v51 }
 0x5e5   : > { %v1006_v52 = vld [vmem:[%s2805_s10] sm:$0x3] }
 0x5e6   : > { %1011 = vst.msk [vmem:[#allocation4 + $0xa] ss:$8 sm:$0x3] %vm2688_vm1, %v1006_v52 }
 0x600   : > { %v993_v59 = vpop.permute.xlu1 %992 }
 0x601   : > { %v994_v60 = vrot.slane %v993_v59, 7 }
 0x603   : > { %v995_v62 = vsel %vm3439_vm9, %v994_v60, %v993_v59  ;;  %vm3479_vm9 = vmmov %vm3478_vm10 }
 0x604   : > { %v997_v55 = vmin.f32 %v972_v61, %v995_v62 }
 0x606   : > { %v998_v63 = vmin.f32 %v997_v55, %v3015_v54 }
 0x608   : > { %1000 = vrot.lane.b32.xlu1 %v998_v63, %s2500_s30 }
 0x60c   : > { %1020 = vrot.lane.b32.xlu1 %v2501_v44, %s2503_s13 }
 0x610   : > { %1032 = vrot.lane.b32.xlu1 %v2501_v44, %s2504_s14 }
 0x67a   : > { %v1001_v0 = vpop.permute.xlu1 %1000 }
 0x67b   : > { %v1002_v1 = vrot.slane %v1001_v0, 1 }
 0x67d   : > { %v1003_v2 = vsel %vm3477_vm12, %v1001_v0, %v1002_v1 }
 0x67e   : > { %v1005_v6 = vsub.f32 %v2839_v53, %v1003_v2  ;;  %1013 = vst.msk [vmem:[#allocation2] sm:$0x3] %vm2688_vm1, %v1003_v2  ;;  %v1021_v22 = vpop.permute.xlu1 %1020 }
 0x680   : > { %1007 = vst.msk [vmem:[#allocation4 + $0x8] ss:$8 sm:$0x3] %vm2688_vm1, %v1005_v6 }
 0x682   : > { %v1033_v25 = vpop.permute.xlu1 %1032 }
 0x685   : > { %v3089_v54 = vld [vmem:[#allocation2] sm:$0x3] }
 0x686   : > { %1353 = vst.msk [vmem:[#allocation3 + $0x1] sm:$0x3] %vm2688_vm1, %v3089_v54 }
 0x687   : > { %v3094_v40 = vld [vmem:[#allocation4 + $0x8] sm:$0xff]  ;;  %v3096_v10 = vld [vmem:[#allocation4 + $0x10] sm:$0xff] }
 0x688   : > { %v2269_v11 = vpack.i.bf16 %v3096_v10, %v3094_v40  ;;  %1545 = vst.msk [vmem:[#allocation4 + $0x9] ss:$8 sm:$0x3] %vm2688_vm1, %v3089_v54  ;;  %v2284_v53 = vpack.i.bf16 %v2501_v44, %v3096_v10 }
 0x68a   : > { %2270 = vrot.lane.b32.xlu0 %v2269_v11, %s2500_s30  ;;  %2265 = vrot.lane.b32.xlu1 %v2269_v11, %s2503_s13 }
 0x68d   : > { %v3118_v57 = vld [vmem:[#allocation3] sm:$0x7] }
 0x68e   : > { %2280 = vrot.lane.b32.xlu0 %v2269_v11, %s2495_s22  ;;  %2275 = vrot.lane.b32.xlu1 %v2269_v11, %s2504_s14  ;;  %v1360_v12 = vrot.slane %v3118_v57, %v2705_v7  ;;  %v1368_v13 = vrot.slane %v3118_v57, %v2707_v8  ;;  %v1364_v14 = vrot.slane %v3118_v57, %v2709_v9  ;;  %v1355_v15 = vld [vmem:[#allocation3 + $0x1] sm:$0x7] }
 0x68f   : > { %v1389_v17 = vrot.slane %v1355_v15, %v2709_v9  ;;  %v1385_v18 = vrot.slane %v1355_v15, %v2705_v7  ;;  %v1393_v20 = vrot.slane %v1355_v15, %v2707_v8 }
 0x692   : > { %1062 = vrot.lane.b32.xlu0 %v3094_v40, %s2496_s24  ;;  %2285 = vrot.lane.b32.xlu1 %v2284_v53, %s2496_s24 }
 0x696   : > { %2295 = vrot.lane.b32.xlu0 %v2284_v53, %s2498_s29  ;;  %2290 = vrot.lane.b32.xlu1 %v2284_v53, %s2505_s15 }
 0x69a   : > { %1108 = vrot.lane.b32.xlu0 %v3094_v40, %s2498_s29  ;;  %1074 = vrot.lane.b32.xlu1 %v3094_v40, %s2505_s15 }
 0x69e   : > { %1090 = vrot.lane.b32.xlu0 %v2501_v44, %s2506_s16  ;;  %1088 = vrot.lane.b32.xlu1 %v3096_v10, %s2506_s16 }
 0x6a2   : > { %1369 = vrot.lane.b32.xlu0 %v1360_v12, %s2495_s22  ;;  %1086 = vrot.lane.b32.xlu1 %v3094_v40, %s2506_s16 }
 0x6a6   : > { %1373 = vrot.lane.b32.xlu0 %v1368_v13, %s2495_s22  ;;  %1371 = vrot.lane.b32.xlu1 %v1364_v14, %s2495_s22 }
 0x6aa   : > { %1396 = vrot.lane.b32.xlu0 %v1389_v17, %s2496_s24  ;;  %1394 = vrot.lane.b32.xlu1 %v1385_v18, %s2496_s24 }
 0x6ae   : > { %1406 = vrot.lane.b32.xlu0 %v1355_v15, %s2497_s9  ;;  %1398 = vrot.lane.b32.xlu1 %v1393_v20, %s2496_s24 }
 0x6b2   : > { %1438 = vrot.lane.b32.xlu0 %v3089_v54, %s2498_s29 }
 0x6fc   : > { %v2271_v28 = vpop.permute.xlu0 %2270  ;;  %v2266_v33 = vpop.permute.xlu1 %2265 }
 0x6fd   : > { %v2273_v34 = vunpack.i.h.bf16 %v2271_v28  ;;  %v2272_v36 = vunpack.i.l.bf16 %v2271_v28  ;;  %v2268_v37 = vunpack.i.h.bf16 %v2266_v33  ;;  %v2267_v38 = vunpack.i.l.bf16 %v2266_v33 }
 0x6ff   : > { %v1027_v41 = vsel %vm3478_vm10, %v2267_v38, %v2268_v37  ;;  %v1105_v42 = vsel %vm3477_vm12, %v2272_v36, %v2273_v34  ;;  %v1026_v45 = vsel %vm3479_vm9, %v1021_v22, %v2267_v38  ;;  %v1104_v46 = vsel %vm3480_vm5, %v1099_v23, %v2272_v36 }
 0x700   : > { %v2281_v47 = vpop.permute.xlu0 %2280  ;;  %v2276_v48 = vpop.permute.xlu1 %2275  ;;  %v2090_v49 = vpack.c.bf16 %v1105_v42, %v1027_v41  ;;  %v2093_v51 = vpack.c.bf16 %v1104_v46, %v1026_v45  ;;  %vm3481_vm10 = vcmask 121856   ;;  %vm3483_vm5 = vcmask 1039360  }
 0x701   : > { %v2283_v52 = vunpack.i.h.bf16 %v2281_v47  ;;  %v2282_v56 = vunpack.i.l.bf16 %v2281_v47  ;;  %v2278_v5 = vunpack.i.h.bf16 %v2276_v48  ;;  %v2277_v59 = vunpack.i.l.bf16 %v2276_v48  ;;  %vm3482_vm9 = vmmov %vm3481_vm10 }
 0x702   : > { %2092 = vmatprep.subr.msk.bf16.mxu1 %vm2899_vm13, %v2090_v49  ;;  %vm3484_vm12 = vmmov %vm3483_vm5 }
 0x703   : > { %v1050_v60 = vsel %vm281_vm2, %v1045_v27, %v2282_v56  ;;  %v1051_v61 = vsel %vm281_vm2, %v2282_v56, %v2283_v52  ;;  %v1038_v62 = vsel %vm3481_vm10, %v1033_v25, %v2277_v59  ;;  %v1039_v55 = vsel %vm3482_vm9, %v2277_v59, %v2278_v5  ;;  %2095 = vmatpush1.bf16.msk.msra.mxu1 %vm2908_vm15, %v2093_v51 }
 0x704   : > { %v2096_v63 = vpack.c.bf16 %v1051_v61, %v1039_v55  ;;  %v2099_v0 = vpack.c.bf16 %v1050_v60, %v1038_v62  ;;  %v1063_v1 = vpop.permute.xlu0 %1062  ;;  %v2286_v2 = vpop.permute.xlu1 %2285  ;;  %vm3485_vm10 = vcmask 916480   ;;  %vm3486_vm9 = vcmask 924672  }
 0x705   : > { %v2288_v6 = vunpack.i.h.bf16 %v2286_v2  ;;  %v2287_v11 = vunpack.i.l.bf16 %v2286_v2 }
 0x706   : > { %2098 = vmatprep.subr.msk.bf16.mxu1 %vm2924_vm0, %v2096_v63 }
 0x707   : > { %v1068_v53 = vsel %vm3483_vm5, %v1063_v1, %v2287_v11  ;;  %v1069_v12 = vsel %vm3484_vm12, %v2287_v11, %v2288_v6  ;;  %2101 = vmatpush1.bf16.msk.msra.mxu1 %vm2932_vm14, %v2099_v0  ;;  %vm3487_vm5 = vmmov %vm3485_vm10 }
 0x708   : > { %v2102_v13 = vpack.c.bf16 %v1069_v12, %v3096_v10  ;;  %v2105_v14 = vpack.c.bf16 %v1068_v53, %v3094_v40  ;;  %v2296_v15 = vpop.permute.xlu0 %2295  ;;  %v2291_v17 = vpop.permute.xlu1 %2290  ;;  %vm3488_vm12 = vmmov %vm3486_vm9 }
 0x709   : > { %v2298_v18 = vunpack.i.h.bf16 %v2296_v15  ;;  %v2297_v20 = vunpack.i.l.bf16 %v2296_v15  ;;  %v2293_v22 = vunpack.i.h.bf16 %v2291_v17  ;;  %v2292_v23 = vunpack.i.l.bf16 %v2291_v17 }
 0x70a   : > { %2104 = vmatprep.subr.msk.bf16.mxu1 %vm2945_vm11, %v2102_v13 }
 0x70b   : > { %v1115_v25 = vsel %vm3485_vm10, %v2297_v20, %v2298_v18  ;;  %v1081_v27 = vsel %vm3486_vm9, %v2292_v23, %v2293_v22  ;;  %2107 = vmatpush1.bf16.msk.msra.mxu1 %vm2954_vm8, %v2105_v14  ;;  %vm3489_vm10 = vcmask 908288  }
 0x70c   : > { %v2108_v28 = vpack.c.bf16 %v1115_v25, %v1081_v27  ;;  %v1109_v10 = vpop.permute.xlu0 %1108  ;;  %v1075_v33 = vpop.permute.xlu1 %1074  ;;  %vm3490_vm9 = vmmov %vm3489_vm10 }
 0x70d   : > { %v1114_v40 = vsel %vm3487_vm5, %v1109_v10, %v2297_v20  ;;  %v1080_v34 = vsel %vm3488_vm12, %v1075_v33, %v2292_v23  ;;  %vm3491_vm5 = vcmask 588800  }
 0x70e   : > { %v2111_v36 = vpack.c.bf16 %v1114_v40, %v1080_v34  ;;  %2110 = vmatprep.subr.msk.bf16.mxu1 %vm2899_vm13, %v2108_v28  ;;  %vm3492_vm12 = vmmov %vm3491_vm5 }
 0x710   : > { %v1091_v37 = vpop.permute.xlu0 %1090  ;;  %v1089_v38 = vpop.permute.xlu1 %1088  ;;  %2113 = vmatpush1.bf16.msk.msra.mxu1 %vm2908_vm15, %v2111_v36 }
 0x711   : > { %v1093_v41 = vsel %vm3489_vm10, %v1089_v38, %v1091_v37  ;;  %vm3493_vm10 = vcmask 1039360  }
 0x712   : > { %2023 = vmatprep.subr.msk.mxu1 %vm2743_vm7, %v1093_v41 }
 0x714   : > { %v1370_v42 = vpop.permute.xlu0 %1369  ;;  %v1087_v45 = vpop.permute.xlu1 %1086 }
 0x715   : > { %v1092_v46 = vsel %vm3490_vm9, %v1087_v45, %v1089_v38  ;;  %vm3494_vm9 = vmmov %vm3491_vm5 }
 0x716   : > { %2024 = vmatpush1.msk.msra.mxu1 %vm2739_vm6, %v1092_v46 }
 0x717   : > { %2025 = vmatmul.mubr.msk.f32.vlgmr.msra.gmra.mrb[0].mxu1 %vm3491_vm5, %v2973_v16  ;;  %vm3495_vm5 = vmmov %vm3493_vm10 }
 0x718   : > { %v1374_v47 = vpop.permute.xlu0 %1373  ;;  %v1372_v48 = vpop.permute.xlu1 %1371  ;;  %1204 = vmatprep.mubr.f32.mxu1 %v2501_v44 }
 0x719   : > { %v1375_v56 = vsel %vm281_vm2, %v1370_v42, %v1372_v48  ;;  %v1376_v5 = vsel %vm281_vm2, %v1372_v48, %v1374_v47 }
 0x71a   : > { %v1379_v60 = vsel %vm2731_vm3, %v1375_v56, inf  ;;  %v1380_v61 = vsel %vm2735_vm4, %v1376_v5, inf  ;;  %v1231_v56 = vld [vmem:[%s3425_s2] sm:$0x1] }
 0x71b   : > { %2026 = vmatmul.mubr.msk.f32.gmra.mrb[2].mxu1 %vm3492_vm12, %v2981_v21  ;;  %vm3496_vm12 = vmmov %vm3494_vm9 }
 0x71c   : > { %v1397_v49 = vpop.permute.xlu0 %1396  ;;  %v1395_v51 = vpop.permute.xlu1 %1394  ;;  %1210 = vmatprep.mubr.f32.mxu1 %v2501_v44 }
 0x71d   : > { %v1400_v52 = vsel %vm3493_vm10, %v1395_v51, %v1397_v49  ;;  %vm3497_vm10 = vcmask 785408  }
 0x71e   : > { %v1404_v16 = vsel %vm2739_vm6, %v1400_v52, inf }
 0x71f   : > { %2027 = vmatmul.mubr.msk.f32.gmra.mrb[4].mxu1 %vm3494_vm9, %v2986_v24  ;;  %v1412_v55 = vmin.f32 %v1379_v60, %v1404_v16  ;;  %vm3498_vm9 = vcmask 916480  }
 0x720   : > { %v1399_v59 = vpop.permute.xlu1 %1398  ;;  %1216 = vmatprep.mubr.f32.mxu1 %v2501_v44  ;;  %v1407_v6 = vpop.permute.xlu0 %1406 }
 0x721   : > { %v1401_v21 = vsel %vm3495_vm5, %v1397_v49, %v1399_v59  ;;  %v1408_v11 = vrot.slane %v1407_v6, 7  ;;  %vm3499_vm5 = vmmov %vm3498_vm9 }
 0x722   : > { %v1405_v62 = vsel %vm2743_vm7, %v1401_v21, inf }
 0x723   : > { %v1413_v63 = vmin.f32 %v1380_v61, %v1405_v62  ;;  %2028 = vmatmul.mubr.msk.f32.gmra.mrb[6].mxu1 %vm3496_vm12, %v2996_v35  ;;  %v1409_v12 = vsel %vm3497_vm10, %v1408_v11, %v1407_v6  ;;  %vm3500_vm12 = vcmask 261120   ;;  %vm3501_vm10 = vcmask 130048  }
 0x724   : > { %1734 = vmatprep.mubr.f32.mxu1 %v2501_v44  ;;  %v1439_v53 = vpop.permute.xlu0 %1438  ;;  %v1411_v17 = vmin.f32 %v3118_v57, %v1409_v12 }
 0x725   : > { %v1416_v0 = vcombine.low %v1412_v55, %v1413_v63  ;;  %v1440_v14 = vrot.slane %v1439_v53, 7 }
 0x727   : > { %v1423_v1 = vrot.slane %v1416_v0, %v2759_v43  ;;  %v1441_v22 = vsel %vm3499_vm5, %v1440_v14, %v1439_v53 }
 0x729   : > { %v1430_v2 = vrot.slane %v1423_v1, %v2759_v43 }
 0x72b   : > { %1431 = vrot.lane.b32.xlu1 %v1430_v2, %s2498_s29  ;;  %v1232_v2 = vld [vmem:[#allocation5] sm:$0x1] }
 0x79d   : > { %v1432_v13 = vpop.permute.xlu1 %1431 }
 0x79e   : > { %v1433_v15 = vrot.slane %v1432_v13, 7 }
 0x7a0   : > { %v1434_v18 = vsel %vm3498_vm9, %v1433_v15, %v1432_v13  ;;  %vm3502_vm9 = vcmask 1039360  }
 0x7a1   : > { %v1436_v20 = vmin.f32 %v1411_v17, %v1434_v18  ;;  %vm3503_vm5 = vmmov %vm3502_vm9 }
 0x7a3   : > { %v3213_v23 = vmin.f32 %v1436_v20, %v1441_v22 }
 0x7a5   : > { %1445 = vrot.lane.b32.xlu1 %v3213_v23, %s2500_s30 }
 0x7ea   : > { %v1200_v25 = vpop.f32.mrb[0].mxu1 }
 0x7eb   : > { %v1202_v27 = vpop.f32.mrb[1].mxu1  ;;  %v1223_v28 = vmax.f32 %v1200_v25, 0.0 }
 0x7ec   : > { %v1224_v10 = vmax.f32 %v1202_v27, 0.0 }
 0x7ee   : > { %v1206_v33 = vpop.f32.mrb[2].mxu1 }
 0x7ef   : > { %v1225_v40 = vmax.f32 %v1206_v33, 0.0  ;;  %v1208_v34 = vpop.f32.mrb[3].mxu1 }
 0x7f0   : > { %v1226_v36 = vmax.f32 %v1208_v34, 0.0 }
 0x7f1   : > { %v2116_v37 = vpack.c.bf16 %v1225_v40, %v1223_v28 }
 0x7f2   : > { %v2114_v57 = vpack.c.bf16 %v1226_v36, %v1224_v10  ;;  %v1212_v38 = vpop.f32.mrb[4].mxu1 }
 0x7f3   : > { %v1214_v41 = vpop.f32.mrb[5].mxu1  ;;  %v1227_v42 = vmax.f32 %v1212_v38, 0.0 }
 0x7f4   : > { %2115 = vmatprep.subr.bf16.mxu0 %v2114_v57  ;;  %v1228_v45 = vmax.f32 %v1214_v41, 0.0 }
 0x7f5   : > { %2117 = vmatpush1.bf16.msra.mxu0 %v2116_v37 }
 0x7f6   : > { %v1218_v46 = vpop.f32.mrb[6].mxu1 }
 0x7f7   : > { %v1229_v47 = vmax.f32 %v1218_v46, 0.0  ;;  %v1220_v48 = vpop.f32.mrb[7].mxu1 }
 0x7f8   : > { %v1230_v49 = vmax.f32 %v1220_v48, 0.0 }
 0x7f9   : > { %v2120_v51 = vpack.c.bf16 %v1229_v47, %v1227_v42 }
 0x7fa   : > { %v2118_v52 = vpack.c.bf16 %v1230_v49, %v1228_v45 }
 0x7fc   : > { %2119 = vmatprep.subr.bf16.mxu0 %v2118_v52  ;;  %v1316_v52 = vld [vmem:[#allocation4 + $0x8] ss:$8 sm:$0x3] }
 0x7fd   : > { %2121 = vmatpush1.bf16.msra.mxu0 %v2120_v51 }
 0x800   : > { %2029 = vmatmul.mubr.msk.f32.vlgmr.msra.gmra.mrb[10].mxu0 %vm3500_vm12, %v1231_v56  ;;  %vm3505_vm12 = vcmask 916480  }
 0x801   : > { %1845 = vmatprep.mubr.f32.mxu0 %v2501_v44 }
 0x817   : > { %v1446_v5 = vpop.permute.xlu1 %1445 }
 0x818   : > { %v1447_v16 = vrot.slane %v1446_v5, 1 }
 0x81a   : > { %v1448_v59 = vsel %vm3501_vm10, %v1446_v5, %v1447_v16 }
 0x81b   : > { %1450 = vst.msk [vmem:[#allocation3 + $0x1] sm:$0x3] %vm2688_vm1, %v1448_v59  ;;  %v1349_v59 = vld [vmem:[%s2805_s10] sm:$0x3] }
 0x822   : > { %v3225_v21 = vld [vmem:[#allocation3] sm:$0x7] }
 0x823   : > { %v1461_v60 = vrot.slane %v3225_v21, %v2709_v9  ;;  %v1457_v61 = vrot.slane %v3225_v21, %v2705_v7  ;;  %v1452_v62 = vld [vmem:[#allocation3 + $0x1] sm:$0x7]  ;;  %v1465_v63 = vrot.slane %v3225_v21, %v2707_v8 }
 0x824   : > { %v1482_v55 = vrot.slane %v1452_v62, %v2705_v7  ;;  %v1490_v0 = vrot.slane %v1452_v62, %v2707_v8  ;;  %v1486_v1 = vrot.slane %v1452_v62, %v2709_v9 }
 0x825   : > { %1468 = vrot.lane.b32.xlu1 %v1461_v60, %s2495_s22  ;;  %1466 = vrot.lane.b32.xlu0 %v1457_v61, %s2495_s22 }
 0x829   : > { %1491 = vrot.lane.b32.xlu1 %v1482_v55, %s2496_s24  ;;  %1470 = vrot.lane.b32.xlu0 %v1465_v63, %s2495_s22 }
 0x82d   : > { %1495 = vrot.lane.b32.xlu1 %v1490_v0, %s2496_s24  ;;  %1493 = vrot.lane.b32.xlu0 %v1486_v1, %s2496_s24 }
 0x831   : > { %1503 = vrot.lane.b32.xlu0 %v1452_v62, %s2497_s9 }
 0x835   : > { %1235 = vperm.xlu0 %2263, %v1232_v2  }
 0x839   : > { %1556 = vrot.lane.b32.xlu0 %v2501_v44, %s2503_s13 }
 0x83d   : > { %1568 = vrot.lane.b32.xlu0 %v2501_v44, %s2504_s14 }
 0x897   : > { %v1469_v6 = vpop.permute.xlu1 %1468  ;;  %v1467_v11 = vpop.permute.xlu0 %1466 }
 0x898   : > { %v1472_v9 = vsel %vm281_vm2, %v1467_v11, %v1469_v6 }
 0x899   : > { %v1476_v18 = vsel %vm2731_vm3, %v1472_v9, inf  ;;  %vm1317_vm3 = vcmp.eq.f32.partialorder %v1316_v52, 1.0 }
 0x89b   : > { %v1492_v53 = vpop.permute.xlu1 %1491  ;;  %v1471_v8 = vpop.permute.xlu0 %1470 }
 0x89c   : > { %v1473_v12 = vsel %vm281_vm2, %v1469_v6, %v1471_v8 }
 0x89d   : > { %v1477_v44 = vsel %vm2735_vm4, %v1473_v12, inf  ;;  %vm3504_vm4 = vcmask 785408  }
 0x89f   : > { %v1496_v13 = vpop.permute.xlu1 %1495  ;;  %v1494_v14 = vpop.permute.xlu0 %1493 }
 0x8a0   : > { %v1497_v15 = vsel %vm3502_vm9, %v1492_v53, %v1494_v14  ;;  %v1498_v17 = vsel %vm3503_vm5, %v1494_v14, %v1496_v13  ;;  %v3277_v53 = vld [vmem:[#allocation4] sm:$0xff]  ;;  %vm3506_vm9 = vmmov %vm3501_vm10 }
 0x8a1   : > { %v1501_v20 = vsel %vm2739_vm6, %v1497_v15, inf  ;;  %v1502_v22 = vsel %vm2743_vm7, %v1498_v17, inf  ;;  %vm3507_vm5 = vmmov %vm3506_vm9 }
 0x8a2   : > { %v1509_v25 = vmin.f32 %v1476_v18, %v1501_v20  ;;  %v1510_v27 = vmin.f32 %v1477_v44, %v1502_v22 }
 0x8a3   : > { %v1504_v29 = vpop.permute.xlu0 %1503 }
 0x8a4   : > { %v1513_v28 = vcombine.low %v1509_v25, %v1510_v27  ;;  %v1505_v62 = vrot.slane %v1504_v29, 7 }
 0x8a6   : > { %v1520_v10 = vrot.slane %v1513_v28, %v2759_v43  ;;  %v1506_v55 = vsel %vm3504_vm4, %v1505_v62, %v1504_v29 }
 0x8a7   : > { %v1508_v1 = vmin.f32 %v3225_v21, %v1506_v55 }
 0x8a8   : > { %v1527_v33 = vrot.slane %v1520_v10, %v2759_v43 }
 0x8aa   : > { %1528 = vrot.lane.b32.xlu1 %v1527_v33, %s2498_s29 }
 0x8b4   : > { %v1236_v40 = vpop.permute.xlu0 %1235 }
 0x8b5   : > { %v1241_v30 = vrot.slane %v1236_v40, %v2705_v7 }
 0x8b8   : > { %v1557_v17 = vpop.permute.xlu0 %1556 }
 0x8bc   : > { %v1569_v44 = vpop.permute.xlu0 %1568 }
 0x8d3   : > { %v1311_v34 = vpop.f32.mrb[10].mxu0 }
 0x8d4   : > { %v1312_v36 = vadd.f32 %v1311_v34, %v1241_v30  ;;  %v1313_v37 = vpop.f32.mrb[11].mxu0 }
 0x8d5   : > { %v1314_v57 = vadd.f32 %v1313_v37, %v1241_v30 }
 0x8d6   : > { %v2030_v38 = vmul.f32 -1.442695, %v1312_v36 }
 0x8d7   : > { %v2031_v41 = vmul.f32 -1.442695, %v1314_v57 }
 0x8d8   : > { %2343 = vpow2.f32 %v2030_v38 }
 0x8d9   : > { %2345 = vpow2.f32 %v2031_v41 }
 0x8e2   : > { %v2344_v42 = vpop.eup %2343 }
 0x8e3   : > { %v2346_v45 = vpop.eup %2345  ;;  %v1324_v46 = vadd.f32 1.0, %v2344_v42 }
 0x8e4   : > { %v1325_v47 = vadd.f32 1.0, %v2346_v45 }
 0x8e5   : > { %2347 = vrcp.f32 %v1324_v46 }
 0x8e6   : > { %2349 = vrcp.f32 %v1325_v47 }
 0x8ef   : > { %v2348_v48 = vpop.eup %2347 }
 0x8f0   : > { %v2350_v49 = vpop.eup %2349 }
 0x8f1   : > { %v1332_v51 = vcombine.low %v2348_v48, %v2350_v49 }
 0x8f3   : > { %v1339_v56 = vrot.slane %v1332_v51, %v2759_v43 }
 0x8f5   : > { %v1346_v5 = vrot.slane %v1339_v56, %v2759_v43 }
 0x8f7   : > { %v1348_v16 = vsel %vm1317_vm3, %v1346_v5, 0.0  ;;  %vm3508_vm3 = vcmask 138240  }
 0x8f8   : > { %v1350_v60 = vsub.f32 %v1349_v59, %v1348_v16  ;;  %vm3509_vm4 = vmmov %vm3508_vm3 }
 0x8fa   : > { %1351 = vst.msk [vmem:[%s2805_s10] sm:$0x3] %vm2688_vm1, %v1350_v60 }
 0x901   : > { %v1542_v61 = vld [vmem:[%s2805_s10] sm:$0x3] }
 0x902   : > { %1547 = vst.msk [vmem:[#allocation4 + $0xa] ss:$8 sm:$0x3] %vm2688_vm1, %v1542_v61 }
 0x91c   : > { %v1529_v63 = vpop.permute.xlu1 %1528 }
 0x91d   : > { %v1530_v0 = vrot.slane %v1529_v63, 7 }
 0x91f   : > { %v1531_v2 = vsel %vm3505_vm12, %v1530_v0, %v1529_v63  ;;  %vm3510_vm12 = vcmask 121856  }
 0x920   : > { %v1533_v6 = vmin.f32 %v1508_v1, %v1531_v2 }
 0x922   : > { %v1534_v11 = vmin.f32 %v1533_v6, %v3213_v23 }
 0x924   : > { %1536 = vrot.lane.b32.xlu1 %v1534_v11, %s2500_s30 }
 0x928   : > { %1634 = vrot.lane.b32.xlu1 %v3277_v53, %s2500_s30 }
 0x92c   : > { %1580 = vrot.lane.b32.xlu1 %v3277_v53, %s2495_s22 }
 0x996   : > { %v1537_v8 = vpop.permute.xlu1 %1536 }
 0x997   : > { %v1538_v9 = vrot.slane %v1537_v8, 1 }
 0x999   : > { %v1539_v12 = vsel %vm3501_vm10, %v1537_v8, %v1538_v9  ;;  %vm3511_vm10 = vmmov %vm3510_vm12 }
 0x99a   : > { %v1541_v21 = vsub.f32 %v3089_v54, %v1539_v12  ;;  %1549 = vst.msk [vmem:[#allocation2] sm:$0x3] %vm2688_vm1, %v1539_v12  ;;  %v1635_v15 = vpop.permute.xlu1 %1634 }
 0x99c   : > { %1543 = vst.msk [vmem:[#allocation4 + $0x8] ss:$8 sm:$0x3] %vm2688_vm1, %v1541_v21 }
 0x99e   : > { %v1581_v18 = vpop.permute.xlu1 %1580 }
 0x9a3   : > { %v3289_v23 = vld [vmem:[#allocation4 + $0x8] sm:$0xff]  ;;  %v3291_v13 = vld [vmem:[#allocation4 + $0x10] sm:$0xff] }
 0x9a4   : > { %v2304_v14 = vpack.i.bf16 %v3291_v13, %v3289_v23  ;;  %v2319_v54 = vpack.i.bf16 %v3277_v53, %v3291_v13 }
 0x9a6   : > { %2305 = vrot.lane.b32.xlu1 %v2304_v14, %s2500_s30  ;;  %2300 = vrot.lane.b32.xlu0 %v2304_v14, %s2503_s13  ;;  %s1889_s30 = scalar_lea.sflag [#allocation8], %s2674_s8  ;;  %s2509_s13 = smov [#allocation11]  }
 0x9aa   : > { %2315 = vrot.lane.b32.xlu1 %v2304_v14, %s2495_s22  ;;  %2310 = vrot.lane.b32.xlu0 %v2304_v14, %s2504_s14  ;;  %s1903_s22 = sshll.u32 %s2805_s10, 4  ;;  %s2422_s14 = sshll.u32 %s2509_s13, 4  ;;  %s3378_s22 = int_to_ptr.vmem [resolvable:$true] %s1903_s22  ;;  %s2423_s14 = int_to_ptr.vmem [resolvable:$false] %s2422_s14 }
 0x9ab   : > { %s2418_s3 = scalar_lea.vmem %s3378_s22, 32  ;;  %p2425_p10 = scmp.lt.s32.totalorder %s3378_s22, %s2423_s14 }
 0x9ac   : > { %p2419_p4 = scmp.ne.s32.totalorder %s3378_s22, %s2418_s3 }
 0x9ae   : > { %1598 = vrot.lane.b32.xlu1 %v3289_v23, %s2496_s24  ;;  %2320 = vrot.lane.b32.xlu0 %v2319_v54, %s2496_s24  ;;  %p2420_p6 = pnand %p2419_p4, %p2629_p12 }
 0x9b0   : > { %p2421_p8 = pneg %p2420_p6 }
 0x9b2   : > { %2330 = vrot.lane.b32.xlu1 %v2319_v54, %s2498_s29  ;;  %2325 = vrot.lane.b32.xlu0 %v2319_v54, %s2505_s15 }
 0x9b6   : > { %1644 = vrot.lane.b32.xlu1 %v3289_v23, %s2498_s29  ;;  %1610 = vrot.lane.b32.xlu0 %v3289_v23, %s2505_s15  ;;  %s3376_s29 = scalar_lea.hbm %s3427_s4, %s2057_s12  ;;  %s2424_s15 = scalar_lea.vmem %s2423_s14, 64 }
 0x9b7   : > { %p2426_p13 = scmp.lt.s32.totalorder %s2424_s15, %s2418_s3 }
 0x9b9   : > { %p2427_p3 = por %p2426_p13, %p2425_p10 }
 0x9ba   : > { %1626 = vrot.lane.b32.xlu1 %v3277_v53, %s2506_s16  ;;  %1624 = vrot.lane.b32.xlu0 %v3291_v13, %s2506_s16 }
 0x9bb   : > { %p2428_p7 = pnand %p2427_p3, %p2421_p8 }
 0x9be   : > { %1622 = vrot.lane.b32.xlu0 %v3289_v23, %s2506_s16  ;;  %1771 = vperm.xlu1 %2334, %v1768_v32  }
 0xa18   : > { %v2306_v20 = vpop.permute.xlu1 %2305  ;;  %v2301_v22 = vpop.permute.xlu0 %2300 }
 0xa19   : > { %v2308_v25 = vunpack.i.h.bf16 %v2306_v20  ;;  %v2307_v27 = vunpack.i.l.bf16 %v2306_v20  ;;  %v2303_v28 = vunpack.i.h.bf16 %v2301_v22  ;;  %v2302_v10 = vunpack.i.l.bf16 %v2301_v22 }
 0xa1b   : > { %v1640_v33 = vsel %vm3506_vm9, %v1635_v15, %v2307_v27  ;;  %v1641_v29 = vsel %vm3507_vm5, %v2307_v27, %v2308_v25  ;;  %v1562_v40 = vsel %vm3508_vm3, %v1557_v17, %v2302_v10  ;;  %v1563_v30 = vsel %vm3509_vm4, %v2302_v10, %v2303_v28  ;;  %v1654_v15 = vld [vmem:[#allocation9] sm:$0xff] }
 0xa1c   : > { %v2122_v34 = vpack.c.bf16 %v1641_v29, %v1563_v30  ;;  %v2125_v36 = vpack.c.bf16 %v1640_v33, %v1562_v40  ;;  %v2316_v37 = vpop.permute.xlu1 %2315  ;;  %v2311_v57 = vpop.permute.xlu0 %2310  ;;  %vm3512_vm9 = vcmask 1039360   ;;  %vm3520_vm4 = vcmask 588800  }
 0xa1d   : > { %v2318_v38 = vunpack.i.h.bf16 %v2316_v37  ;;  %v2317_v41 = vunpack.i.l.bf16 %v2316_v37  ;;  %v2313_v42 = vunpack.i.h.bf16 %v2311_v57  ;;  %v2312_v45 = vunpack.i.l.bf16 %v2311_v57  ;;  %vm3513_vm5 = vmmov %vm3512_vm9  ;;  %v1767_v57 = vld [vmem:[%s3425_s2] sm:$0x1] }
 0xa1e   : > { %2124 = vmatprep.subr.msk.bf16.mxu1 %vm2899_vm13, %v2122_v34 }
 0xa1f   : > { %v1586_v46 = vsel %vm281_vm2, %v1581_v18, %v2317_v41  ;;  %v1587_v47 = vsel %vm281_vm2, %v2317_v41, %v2318_v38  ;;  %v1574_v48 = vsel %vm3510_vm12, %v1569_v44, %v2312_v45  ;;  %v1575_v49 = vsel %vm3511_vm10, %v2312_v45, %v2313_v42  ;;  %2127 = vmatpush1.bf16.msk.msra.mxu1 %vm2908_vm15, %v2125_v36 }
 0xa20   : > { %v2128_v51 = vpack.c.bf16 %v1587_v47, %v1575_v49  ;;  %v2131_v52 = vpack.c.bf16 %v1586_v46, %v1574_v48  ;;  %v1599_v56 = vpop.permute.xlu1 %1598  ;;  %v2321_v5 = vpop.permute.xlu0 %2320  ;;  %vm3514_vm2 = vcmask 916480  }
 0xa21   : > { %v2323_v16 = vunpack.i.h.bf16 %v2321_v5  ;;  %v2322_v59 = vunpack.i.l.bf16 %v2321_v5 }
 0xa22   : > { %2130 = vmatprep.subr.msk.bf16.mxu1 %vm2924_vm0, %v2128_v51  ;;  %vm3515_vm0 = vcmask 924672  }
 0xa23   : > { %v1604_v60 = vsel %vm3512_vm9, %v1599_v56, %v2322_v59  ;;  %v1605_v61 = vsel %vm3513_vm5, %v2322_v59, %v2323_v16  ;;  %2133 = vmatpush1.bf16.msk.msra.mxu1 %vm2932_vm14, %v2131_v52  ;;  %vm3516_vm14 = vmmov %vm3514_vm2 }
 0xa24   : > { %v2134_v62 = vpack.c.bf16 %v1605_v61, %v3291_v13  ;;  %v2137_v55 = vpack.c.bf16 %v1604_v60, %v3289_v23  ;;  %v2331_v63 = vpop.permute.xlu1 %2330  ;;  %v2326_v0 = vpop.permute.xlu0 %2325  ;;  %vm3517_vm3 = vmmov %vm3515_vm0  ;;  %v1852_v60 = vld [vmem:[#allocation4 + $0x8] ss:$8 sm:$0x3] }
 0xa25   : > { %v2333_v1 = vunpack.i.h.bf16 %v2331_v63  ;;  %v2332_v2 = vunpack.i.l.bf16 %v2331_v63  ;;  %v2328_v6 = vunpack.i.h.bf16 %v2326_v0  ;;  %v2327_v11 = vunpack.i.l.bf16 %v2326_v0  ;;  %v1885_v63 = vld [vmem:[%s2805_s10] sm:$0x3] }
 0xa26   : > { %2136 = vmatprep.subr.msk.bf16.mxu1 %vm2945_vm11, %v2134_v62  ;;  %vm3518_vm11 = vcmask 908288   ;;  %vm1853_vm12 = vcmp.eq.f32.partialorder %v1852_v60, 1.0 }
 0xa27   : > { %v1651_v39 = vsel %vm3514_vm2, %v2332_v2, %v2333_v1  ;;  %v1617_v8 = vsel %vm3515_vm0, %v2327_v11, %v2328_v6  ;;  %2139 = vmatpush1.bf16.msk.msra.mxu1 %vm2954_vm8, %v2137_v55  ;;  %vm3519_vm8 = vmmov %vm3518_vm11 }
 0xa28   : > { %v2140_v4 = vpack.c.bf16 %v1651_v39, %v1617_v8  ;;  %v1645_v9 = vpop.permute.xlu1 %1644  ;;  %v1611_v12 = vpop.permute.xlu0 %1610 }
 0xa29   : > { %v1650_v21 = vsel %vm3516_vm14, %v1645_v9, %v2332_v2  ;;  %v1616_v23 = vsel %vm3517_vm3, %v1611_v12, %v2327_v11 }
 0xa2a   : > { %v2143_v13 = vpack.c.bf16 %v1650_v21, %v1616_v23  ;;  %2142 = vmatprep.subr.msk.bf16.mxu1 %vm2899_vm13, %v2140_v4  ;;  %vm3521_vm13 = vmmov %vm3520_vm4 }
 0xa2c   : > { %v1627_v50 = vpop.permute.xlu1 %1626  ;;  %v1625_v14 = vpop.permute.xlu0 %1624  ;;  %2145 = vmatpush1.bf16.msk.msra.mxu1 %vm2908_vm15, %v2143_v13  ;;  %vm3522_vm15 = vmmov %vm3520_vm4 }
 0xa2d   : > { %v1629_v54 = vsel %vm3518_vm11, %v1625_v14, %v1627_v50 }
 0xa2e   : > { %2042 = vmatprep.subr.msk.mxu1 %vm2743_vm7, %v1629_v54  ;;  %vm3523_vm7 = vmmov %vm3520_vm4 }
 0xa30   : > { %v1623_v58 = vpop.permute.xlu0 %1622 }
 0xa31   : > { %v1628_v17 = vsel %vm3519_vm8, %v1623_v58, %v1625_v14 }
 0xa32   : > { %2043 = vmatpush1.msk.msra.mxu1 %vm2739_vm6, %v1628_v17  ;;  %vm3524_vm6 = vcmask 261120  }
 0xa33   : > { %2044 = vmatmul.mubr.msk.f32.vlgmr.msra.gmra.mrb[8].mxu1 %vm3520_vm4, %v1654_v15 }
 0xa34   : > { %1740 = vmatprep.mubr.f32.mxu1 %v3277_v53 }
 0xa37   : > { %2045 = vmatmul.mubr.msk.f32.gmra.mrb[10].mxu1 %vm3521_vm13, %v1655_v19 }
 0xa38   : > { %1746 = vmatprep.mubr.f32.mxu1 %v3277_v53 }
 0xa3b   : > { %2046 = vmatmul.mubr.msk.f32.gmra.mrb[12].mxu1 %vm3522_vm15, %v2986_v24 }
 0xa3c   : > { %1752 = vmatprep.mubr.f32.mxu1 %v3277_v53 }
 0xa3d   : > { %v1772_v38 = vpop.permute.xlu1 %1771 }
 0xa3e   : > { %v1777_v41 = vrot.slane %v1772_v38, %v2705_v7 }
 0xa3f   : > { %2047 = vmatmul.mubr.msk.f32.gmra.mrb[14].mxu1 %vm3523_vm7, %v2996_v35 }
 0xb06   : > { %v1736_v31 = vpop.f32.mrb[8].mxu1 }
 0xb07   : > { %v1738_v26 = vpop.f32.mrb[9].mxu1  ;;  %v1759_v44 = vmax.f32 %v1736_v31, 0.0 }
 0xb08   : > { %v1760_v25 = vmax.f32 %v1738_v26, 0.0 }
 0xb0a   : > { %v1742_v18 = vpop.f32.mrb[10].mxu1 }
 0xb0b   : > { %v1761_v20 = vmax.f32 %v1742_v18, 0.0  ;;  %v1744_v22 = vpop.f32.mrb[11].mxu1 }
 0xb0c   : > { %v1762_v27 = vmax.f32 %v1744_v22, 0.0 }
 0xb0d   : > { %v2148_v28 = vpack.c.bf16 %v1761_v20, %v1759_v44 }
 0xb0e   : > { %v2146_v10 = vpack.c.bf16 %v1762_v27, %v1760_v25  ;;  %v1748_v33 = vpop.f32.mrb[12].mxu1 }
 0xb0f   : > { %v1750_v29 = vpop.f32.mrb[13].mxu1  ;;  %v1763_v53 = vmax.f32 %v1748_v33, 0.0 }
 0xb10   : > { %2147 = vmatprep.subr.bf16.mxu0 %v2146_v10  ;;  %v1764_v30 = vmax.f32 %v1750_v29, 0.0 }
 0xb11   : > { %2149 = vmatpush1.bf16.msra.mxu0 %v2148_v28 }
 0xb12   : > { %v1754_v24 = vpop.f32.mrb[14].mxu1 }
 0xb13   : > { %v1765_v40 = vmax.f32 %v1754_v24, 0.0  ;;  %v1756_v35 = vpop.f32.mrb[15].mxu1 }
 0xb14   : > { %v1766_v34 = vmax.f32 %v1756_v35, 0.0 }
 0xb15   : > { %v2152_v36 = vpack.c.bf16 %v1765_v40, %v1763_v53 }
 0xb16   : > { %v2150_v37 = vpack.c.bf16 %v1766_v34, %v1764_v30 }
 0xb18   : > { %2151 = vmatprep.subr.bf16.mxu0 %v2150_v37 }
 0xb19   : > { %2153 = vmatpush1.bf16.msra.mxu0 %v2152_v36 }
 0xb1c   : > { %2048 = vmatmul.mubr.msk.f32.vlgmr.msra.gmra.mrb[12].mxu0 %vm3524_vm6, %v1767_v57 }
 0xbef   : > { %v1847_v42 = vpop.f32.mrb[12].mxu0 }
 0xbf0   : > { %v1848_v45 = vadd.f32 %v1847_v42, %v1777_v41  ;;  %v1849_v46 = vpop.f32.mrb[13].mxu0 }
 0xbf1   : > { %v1850_v47 = vadd.f32 %v1849_v46, %v1777_v41 }
 0xbf2   : > { %v2049_v48 = vmul.f32 -1.442695, %v1848_v45 }
 0xbf3   : > { %v2050_v49 = vmul.f32 -1.442695, %v1850_v47 }
 0xbf4   : > { %2351 = vpow2.f32 %v2049_v48 }
 0xbf5   : > { %2353 = vpow2.f32 %v2050_v49 }
 0xbfe   : > { %v2352_v51 = vpop.eup %2351 }
 0xbff   : > { %v2354_v52 = vpop.eup %2353  ;;  %v1860_v56 = vadd.f32 1.0, %v2352_v51 }
 0xc00   : > { %v1861_v5 = vadd.f32 1.0, %v2354_v52 }
 0xc01   : > { %2355 = vrcp.f32 %v1860_v56 }
 0xc02   : > { %2357 = vrcp.f32 %v1861_v5 }
 0xc0b   : > { %v2356_v7 = vpop.eup %2355 }
 0xc0c   : > { %v2358_v16 = vpop.eup %2357 }
 0xc0d   : > { %v1868_v59 = vcombine.low %v2356_v7, %v2358_v16 }
 0xc0f   : > { %v1875_v61 = vrot.slane %v1868_v59, %v2759_v43 }
 0xc11   : > { %v1882_v62 = vrot.slane %v1875_v61, %v2759_v43 }
 0xc13   : > { %v1884_v55 = vsel %vm1853_vm12, %v1882_v62, 0.0 }
 0xc14   : > { %v1886_v0 = vsub.f32 %v1885_v63, %v1884_v55 }
 0xc16   : > { %1887 = vst.msk [vmem:[%s2805_s10] sm:$0x3] %vm2688_vm1, %v1886_v0 }
 0xc17   : > { %2431 = shalt.err (!%p2428_p7)
}
 0xc18   : > { %s2432_s8 = scalar_lea.hbm %s3376_s29, 32  ;;  %s2436_s5 = scalar_lea.hbm %s3427_s4, 64 }
 0xc19   : > { %p2433_p9 = scmp.ne.s32.totalorder %s3376_s29, %s2432_s8  ;;  %p2437_p0 = scmp.lt.u32.totalorder %s3376_s29, %s3427_s4 }
 0xc1a   : > { %p2438_p11 = scmp.lt.u32.totalorder %s2436_s5, %s2432_s8  ;;  %p2440_p4 = scmp.lt.u32.totalorder %s2432_s8, %s3376_s29 }
 0xc1b   : > { %p2434_p2 = pnand %p2433_p9, %p2629_p12 }
 0xc1c   : > { %p2439_p1 = por %p2438_p11, %p2437_p0 }
 0xc1d   : > { %p2435_p5 = pneg %p2434_p2 }
 0xc1e   : > { %p2441_p6 = por %p2440_p4, %p2439_p1 }
 0xc20   : > { %p2442_p8 = pnand %p2441_p6, %p2435_p5 }
 0xc22   : > { %2445 = shalt.err (!%p2442_p8)
}
 0xc23   : > { %2160 = dma.vmem_to_hbm [thread:$0]  (%p2629_p12), %s3378_s22, 32, %s3376_s29, %s1889_s30  }
 0xc24 PF: > { %s1915_s27 = sand.u32 1, %s2476_s17   ;;  %p3525_p10 = scmp.ne.s32.totalorder %s3442_s23, 0 }
 0xc25   : > { %p3526_p13 = scmp.ge.s32.totalorder %s2488_s20, 2  ;;  %s1916_s26 = scalar_lea.sflag [#allocation8], %s1915_s27 }
 0xc27   : > { %p2171_p3 = pnand %p3526_p13, %p3525_p10 }
 0xc29   : > { %2471 = dma.done.wait (!%p2171_p3), %s1916_s26, 32  }
 0xc2a   : > { %2473 = vsyncadd (!%p2171_p3), %s1916_s26, 4294967264  ;;  %p20_p7 = scmp.ge.s32.totalorder %s2594_s28, 4   ;;  %s3527_s17 = smov %s2480_s18 }
 0xc2b   : > { %s3528_s18 = smov %s2484_s19  ;;  %s3529_s19 = smov %s2625_s21 }
 0xc2c   : > { %s3530_s20 = smov %s2594_s28  ;;  %22 = sbr.rel (!%p20_p7) target bundleno = 9 (0x9), region = 89 }
 0xc33   :  { %1921 = vsyncpa [#allocation7], 1 }
 0xc34   :  { %1923 = vsyncpa [#allocation7 + $0x1], 1 }
 0xc35   :  { %1924 = vsyncpa [#allocation10], 1 }
 0xc36   :  { %1925 = vsyncpa [#allocation8], 1 }
 0xc37   :  { %1927 = vsyncpa [#allocation8 + $0x1], 1 }

</bundles_post_ra>
